<compile_context>
chip_gen: v7x
topology: tpu7x:2x2x1
jax: 0.10.0
libtpu: 0.0.40
codegen_flags: <defaults>
</compile_context>

<pallas_src>
import math

import jax
import jax.numpy as jnp
from jax import lax
from jax.experimental import pallas as pl
from jax.experimental.pallas import tpu as pltpu

D_MODEL = 32
N_HEAD = 4
HEAD_DIM = D_MODEL // N_HEAD
D_FF = 64
EPS = 1e-5
SCALE = 1.0 / math.sqrt(HEAD_DIM)
D_PAD = 128                     # lane-dense padded feature width
NEG_INF = -1e9

# Stacked-parameter order (each array has a leading num_layers axis):
PARAM_NAMES = (
    "sa_w", "sa_b", "sa_wo", "sa_bo",                       # self-attn
    "ca_wq", "ca_bq", "ca_wkv", "ca_bkv", "ca_wo", "ca_bo",  # cross-attn
    "ff_w1", "ff_b1", "ff_w2", "ff_b2",                      # FFN
    "ln_g", "ln_b",                                          # 3 LayerNorms
)


# ---------------- in-kernel helpers (traced inside the Pallas body) ----------

def _layer_norm(x, gamma, beta):
    """Padded LayerNorm.  Real features live in the first D_MODEL lanes and the
    pad lanes of x are exactly 0, so sums over the full 128 lanes equal sums
    over the real features; gamma/beta are zero on pad lanes so pads stay 0."""
    mu = jnp.sum(x, axis=-1, keepdims=True) * (1.0 / D_MODEL)
    ex2 = jnp.sum(x * x, axis=-1, keepdims=True) * (1.0 / D_MODEL)
    var = ex2 - mu * mu
    return (x - mu) * lax.rsqrt(var + EPS) * gamma + beta


def _attention(q, k, v, wo, bo, mask_add):
    """q: (RQ, D) f32, k/v: (RK, D) f32, wo: (D, D_PAD) bf16, bo: (1, D_PAD) f32,
    mask_add: (RQ, RK) additive f32 (includes the block-diagonal term that stops
    attention across folded batch items).  Returns (RQ, D_PAD) f32 with pad
    lanes exactly 0 (wo/bo are zero-padded)."""
    qb = q.astype(jnp.bfloat16)
    kb = k.astype(jnp.bfloat16)
    vb = v.astype(jnp.bfloat16)
    ctx_heads = []
    for h in range(N_HEAD):                        # per-head score/PV (Dh=8) only
        lo, hi = h * HEAD_DIM, (h + 1) * HEAD_DIM
        s = lax.dot_general(qb[:, lo:hi], kb[:, lo:hi],
                            (((1,), (1,)), ((), ())),
                            preferred_element_type=jnp.float32) * SCALE
        s = s + mask_add
        s = s - jnp.max(s, axis=-1, keepdims=True)
        p = jnp.exp(s)
        p = p * pl.reciprocal(jnp.sum(p, axis=-1, keepdims=True), approx=True)
        ctx_heads.append(jnp.dot(p.astype(jnp.bfloat16), vb[:, lo:hi],
                                 preferred_element_type=jnp.float32))
    ctx = jnp.concatenate(ctx_heads, axis=-1)      # (RQ, D) head-major
    # fused head-concat + out-projection: one matmul, 128-lane output
    return jnp.dot(ctx.astype(jnp.bfloat16), wo,
                   preferred_element_type=jnp.float32) + bo


# --------------------- fused decoder-STACK kernel ----------------------------

def decoder_stack_kernel(
    tgt_ref, mem_ref, self_mask_ref, cross_mask_ref,
    sa_w_ref, sa_b_ref, sa_wo_ref, sa_bo_ref,
    ca_wq_ref, ca_bq_ref, ca_wkv_ref, ca_bkv_ref, ca_wo_ref, ca_bo_ref,
    ff_w1_ref, ff_b1_ref, ff_w2_ref, ff_b2_ref,
    ln_g_ref, ln_b_ref,
    out_ref,
):
    num_layers = sa_w_ref.shape[0]
    bblk, t_len, dp = tgt_ref.shape
    s_len = mem_ref.shape[1]
    rq = bblk * t_len
    rk = bblk * s_len

    # Fold batch items into sublanes: all position-wise math on (rows, 128).
    x0 = tgt_ref[...].astype(jnp.float32).reshape(rq, dp)
    mem = mem_ref[...].astype(jnp.float32).reshape(rk, dp)
    mem_bf = mem.astype(jnp.bfloat16)              # hoisted: reused every layer
    self_mask = self_mask_ref[...]                 # (rq, rq) additive f32
    cross_mask = cross_mask_ref[...]               # (rq, rk) additive f32

    def layer_body(l, x):
        ln_g = ln_g_ref[l]                         # (3, D_PAD)
        ln_b = ln_b_ref[l]

        # ---- masked self-attention: fused QKV projection (one MXU matmul) ----
        x_bf = x.astype(jnp.bfloat16)
        qkv = jnp.dot(x_bf, sa_w_ref[l],
                      preferred_element_type=jnp.float32) + sa_b_ref[l]   # (rq, 3D)
        sa = _attention(qkv[:, 0:D_MODEL],
                        qkv[:, D_MODEL:2 * D_MODEL],
                        qkv[:, 2 * D_MODEL:3 * D_MODEL],
                        sa_wo_ref[l], sa_bo_ref[l], self_mask)
        x = _layer_norm(x + sa, ln_g[0:1], ln_b[0:1])

        # ---- cross-attention over encoder memory ----
        x_bf = x.astype(jnp.bfloat16)
        q = jnp.dot(x_bf, ca_wq_ref[l],
                    preferred_element_type=jnp.float32) + ca_bq_ref[l]    # (rq, D)
        kv = jnp.dot(mem_bf, ca_wkv_ref[l],
                     preferred_element_type=jnp.float32) + ca_bkv_ref[l]  # (rk, 2D)
        ca = _attention(q,
                        kv[:, 0:D_MODEL],
                        kv[:, D_MODEL:2 * D_MODEL],
                        ca_wo_ref[l], ca_bo_ref[l], cross_mask)
        x = _layer_norm(x + ca, ln_g[1:2], ln_b[1:2])

        # ---- position-wise FFN (ReLU) ----
        h = jnp.dot(x.astype(jnp.bfloat16), ff_w1_ref[l],
                    preferred_element_type=jnp.float32) + ff_b1_ref[l]    # (rq, F)
        h = jnp.maximum(h, 0.0)
        ff = jnp.dot(h.astype(jnp.bfloat16), ff_w2_ref[l],
                     preferred_element_type=jnp.float32) + ff_b2_ref[l]   # (rq, D_PAD)
        x = _layer_norm(x + ff, ln_g[2:3], ln_b[2:3])
        return x

    x = lax.fori_loop(0, num_layers, layer_body, x0)

    # Lane-dense (128-wide) unmasked store.
    out_ref[...] = x.reshape(bblk, t_len, dp).astype(out_ref.dtype)


# ---------------------------------- wrapper ----------------------------------

def _const_spec(shape):
    nd = len(shape)
    return pl.BlockSpec(shape, lambda b, _nd=nd: (0,) * _nd)


def transformer_decoder(tgt, memory, tgt_mask, packed_params, *, b_block=None):
    """Mirrors TransformerDecoder.forward (a stack of TransformerDecoderLayer),
    eval mode.  tgt_mask is an ADDITIVE f32 mask of shape (T, T) (0 = attend,
    -1e9 = blocked) or None."""
    B, T, D = tgt.shape
    S = memory.shape[1]
    assert D == D_MODEL
    if tgt_mask is None:
        tgt_mask = jnp.zeros((T, T), jnp.float32)

    if b_block is None:
        # Fold as many batch items as fit in 128 sublane rows.
        b_block = 1
        for c in range(1, B + 1):
            if B % c == 0 and c * T <= 128:
                b_block = c
    nb = B // b_block
    rq, rk = b_block * T, b_block * S

    # Zero-pad the feature dim to 128 lanes -> lane-dense loads/stores.
    tgt_p = jnp.pad(tgt, ((0, 0), (0, 0), (0, D_PAD - D)))
    mem_p = jnp.pad(memory, ((0, 0), (0, 0), (0, D_PAD - D)))

    # Block-diagonal additive masks over the folded rows (no cross-batch attn).
    bq = jnp.arange(rq, dtype=jnp.int32) // T
    bk = jnp.arange(rk, dtype=jnp.int32) // S
    blk_self = jnp.where(bq[:, None] == bq[None, :], 0.0, NEG_INF)
    blk_cross = jnp.where(bq[:, None] == bk[None, :], 0.0, NEG_INF)
    self_mask = (jnp.tile(tgt_mask.astype(jnp.float32), (b_block, b_block))
                 + blk_self).astype(jnp.float32)
    cross_mask = blk_cross.astype(jnp.float32)

    in_specs = [
        pl.BlockSpec((b_block, T, D_PAD), lambda b: (b, 0, 0)),   # tgt
        pl.BlockSpec((b_block, S, D_PAD), lambda b: (b, 0, 0)),   # memory
        _const_spec((rq, rq)),                                    # self mask
        _const_spec((rq, rk)),                                    # cross mask
    ] + [_const_spec(tuple(p.shape)) for p in packed_params]      # resident weights

    # Advisory cost estimate (logical, unpadded sizes).
    L = int(packed_params[0].shape[0])
    attn_flops = 2 * (T * T * D) * 2 + 2 * (T * S * D) * 2       # QK^T + PV
    proj_flops = (2 * T * 3 * D * D + 2 * T * D * D              # self qkv + out
                  + 2 * T * D * D + 2 * S * 2 * D * D + 2 * T * D * D)  # cross
    ffn_flops = 2 * 2 * T * D * D_FF
    flops = L * B * (attn_flops + proj_flops + ffn_flops)
    transcendentals = L * B * N_HEAD * (T * T + T * S)
    bytes_accessed = int(sum(int(p.size) * p.dtype.itemsize for p in packed_params)
                         + tgt_p.size * 4 + mem_p.size * 4
                         + self_mask.size * 4 + cross_mask.size * 4
                         + B * T * D_PAD * 4)

    out = pl.pallas_call(
        decoder_stack_kernel,
        out_shape=jax.ShapeDtypeStruct((B, T, D_PAD), tgt.dtype),
        grid=(nb,),
        in_specs=in_specs,
        out_specs=pl.BlockSpec((b_block, T, D_PAD), lambda b: (b, 0, 0)),
        compiler_params=pltpu.CompilerParams(
            dimension_semantics=("parallel",),        # megacore over batch blocks
            vmem_limit_bytes=32 * 1024 * 1024,
        ),
        cost_estimate=pl.CostEstimate(flops=int(flops),
                                      transcendentals=int(transcendentals),
                                      bytes_accessed=bytes_accessed),
    )(tgt_p, mem_p, self_mask, cross_mask, *packed_params)
    return out[:, :, :D]


# --------------------------------- parameters --------------------------------

def init_layer_params(key, num_layers):
    """Logical (unpadded, f32) per-layer parameters, PyTorch-equivalent layout:
    in_proj (D, 3D) applied as x @ W (q|k|v columns, head-major within each),
    out_proj (D, D) applied as concat(heads) @ W.  NOTE: porting from
    nn.MultiheadAttention requires transposing its (3D, D)/(D, D) weights."""
    D, F = D_MODEL, D_FF

    def one(k):
        ks = jax.random.split(k, 14)
        w = lambda kk, s, sc=0.05: jax.random.normal(kk, s, jnp.float32) * sc
        return dict(
            sa_in_w=w(ks[0], (D, 3 * D)), sa_in_b=w(ks[1], (3 * D,), 0.02),
            sa_out_w=w(ks[2], (D, D)),    sa_out_b=w(ks[3], (D,), 0.02),
            ca_in_w=w(ks[4], (D, 3 * D)), ca_in_b=w(ks[5], (3 * D,), 0.02),
            ca_out_w=w(ks[6], (D, D)),    ca_out_b=w(ks[7], (D,), 0.02),
            ff_w1=w(ks[8], (D, F)),       ff_b1=w(ks[9], (F,), 0.02),
            ff_w2=w(ks[10], (F, D)),      ff_b2=w(ks[11], (D,), 0.02),
            ln_g=1.0 + w(ks[12], (3, D), 0.1),
            ln_b=w(ks[13], (3, D), 0.05),
        )

    return [one(k) for k in jax.random.split(key, num_layers)]


def pack_params(layers):
    """Pad / split / stack the logical params into the kernel layout
    (leading num_layers axis, bf16 matmul weights, 128-lane padded outputs)."""
    D = D_MODEL

    def pad_rows(w):   # (D, n) -> (D_PAD, n)  zero rows for padded input lanes
        return jnp.pad(w, ((0, D_PAD - w.shape[0]), (0, 0)))

    def pad_cols(w):   # (n, D) -> (n, D_PAD)  zero cols keep pad lanes at 0
        return jnp.pad(w, ((0, 0), (0, D_PAD - w.shape[1])))

    def pad_vec(b):    # (D,) -> (1, D_PAD)
        return jnp.pad(b, (0, D_PAD - b.shape[0]))[None, :]

    acc = {n: [] for n in PARAM_NAMES}
    for p in layers:
        acc["sa_w"].append(pad_rows(p["sa_in_w"]).astype(jnp.bfloat16))
        acc["sa_b"].append(p["sa_in_b"][None, :])
        acc["sa_wo"].append(pad_cols(p["sa_out_w"]).astype(jnp.bfloat16))
        acc["sa_bo"].append(pad_vec(p["sa_out_b"]))
        acc["ca_wq"].append(pad_rows(p["ca_in_w"][:, :D]).astype(jnp.bfloat16))
        acc["ca_bq"].append(p["ca_in_b"][:D][None, :])
        acc["ca_wkv"].append(pad_rows(p["ca_in_w"][:, D:]).astype(jnp.bfloat16))
        acc["ca_bkv"].append(p["ca_in_b"][D:][None, :])
        acc["ca_wo"].append(pad_cols(p["ca_out_w"]).astype(jnp.bfloat16))
        acc["ca_bo"].append(pad_vec(p["ca_out_b"]))
        acc["ff_w1"].append(pad_rows(p["ff_w1"]).astype(jnp.bfloat16))
        acc["ff_b1"].append(p["ff_b1"][None, :])
        acc["ff_w2"].append(pad_cols(p["ff_w2"]).astype(jnp.bfloat16))
        acc["ff_b2"].append(pad_vec(p["ff_b2"]))
        acc["ln_g"].append(jnp.pad(p["ln_g"], ((0, 0), (0, D_PAD - D))))
        acc["ln_b"].append(jnp.pad(p["ln_b"], ((0, 0), (0, D_PAD - D))))
    return [jnp.stack(acc[n], axis=0) for n in PARAM_NAMES]


# ------------------------- pure-JAX f32 reference ----------------------------

def _ref_ln(x, g, b):
    mu = jnp.mean(x, axis=-1, keepdims=True)
    var = jnp.mean((x - mu) ** 2, axis=-1, keepdims=True)
    return (x - mu) * lax.rsqrt(var + EPS) * g + b


def _ref_mha(xq, xkv, w_in, b_in, w_out, b_out, mask):
    B, Tq, D = xq.shape
    Tk = xkv.shape[1]
    q = xq @ w_in[:, :D] + b_in[:D]
    k = xkv @ w_in[:, D:2 * D] + b_in[D:2 * D]
    v = xkv @ w_in[:, 2 * D:] + b_in[2 * D:]
    q = q.reshape(B, Tq, N_HEAD, HEAD_DIM)
    k = k.reshape(B, Tk, N_HEAD, HEAD_DIM)
    v = v.reshape(B, Tk, N_HEAD, HEAD_DIM)
    s = jnp.einsum('bqhd,bkhd->bhqk', q, k) * SCALE
    if mask is not None:
        s = s + mask
    p = jax.nn.softmax(s, axis=-1)
    ctx = jnp.einsum('bhqk,bkhd->bqhd', p, v).reshape(B, Tq, D)
    return ctx @ w_out + b_out


def reference_decoder(tgt, memory, mask, layers):
    x = tgt
    for p in layers:
        sa = _ref_mha(x, x, p["sa_in_w"], p["sa_in_b"],
                      p["sa_out_w"], p["sa_out_b"], mask)
        x = _ref_ln(x + sa, p["ln_g"][0], p["ln_b"][0])
        ca = _ref_mha(x, memory, p["ca_in_w"], p["ca_in_b"],
                      p["ca_out_w"], p["ca_out_b"], None)
        x = _ref_ln(x + ca, p["ln_g"][1], p["ln_b"][1])
        h = jnp.maximum(x @ p["ff_w1"] + p["ff_b1"], 0.0)
        ff = h @ p["ff_w2"] + p["ff_b2"]
        x = _ref_ln(x + ff, p["ln_g"][2], p["ln_b"][2])
    return x


if __name__ == "__main__":
    B, T, S = 2, 8, 8
    NUM_LAYERS = 2

    key = jax.random.PRNGKey(0)
    k_tgt, k_mem, k_par = jax.random.split(key, 3)

    tgt = jax.random.normal(k_tgt, (B, T, D_MODEL), jnp.float32)
    memory = jax.random.normal(k_mem, (B, S, D_MODEL), jnp.float32)

    # causal additive tgt_mask (0 keep / -1e9 masked)
    causal = jnp.where(jnp.tril(jnp.ones((T, T), dtype=jnp.bool_)),
                       0.0, NEG_INF).astype(jnp.float32)

    layers = init_layer_params(k_par, NUM_LAYERS)
    packed = pack_params(layers)

    out = transformer_decoder(tgt, memory, causal, packed)
    jax.block_until_ready(out)
    assert out.shape == (B, T, D_MODEL)

    ref = reference_decoder(tgt, memory, causal, layers)
    err = float(jnp.max(jnp.abs(out - ref)))
    # bf16 matmuls + approx-reciprocal softmax vs an exact f32 reference.
    assert err < 7.5e-2, f"kernel vs f32 reference mismatch: max abs err {err}"
    print("KERNEL_OK")
</pallas_src>

<mosaic_0001>
module attributes {stable_mosaic.version = 11 : i64} {
  func.func @decoder_stack_kernel(%arg0: i32, %arg1: memref<2x8x128xf32, #tpu.memory_space<vmem>>, %arg2: memref<2x8x128xf32, #tpu.memory_space<vmem>>, %arg3: memref<16x16xf32, #tpu.memory_space<vmem>>, %arg4: memref<16x16xf32, #tpu.memory_space<vmem>>, %arg5: memref<2x128x96xbf16, #tpu.memory_space<vmem>>, %arg6: memref<2x1x96xf32, #tpu.memory_space<vmem>>, %arg7: memref<2x32x128xbf16, #tpu.memory_space<vmem>>, %arg8: memref<2x1x128xf32, #tpu.memory_space<vmem>>, %arg9: memref<2x128x32xbf16, #tpu.memory_space<vmem>>, %arg10: memref<2x1x32xf32, #tpu.memory_space<vmem>>, %arg11: memref<2x128x64xbf16, #tpu.memory_space<vmem>>, %arg12: memref<2x1x64xf32, #tpu.memory_space<vmem>>, %arg13: memref<2x32x128xbf16, #tpu.memory_space<vmem>>, %arg14: memref<2x1x128xf32, #tpu.memory_space<vmem>>, %arg15: memref<2x128x64xbf16, #tpu.memory_space<vmem>>, %arg16: memref<2x1x64xf32, #tpu.memory_space<vmem>>, %arg17: memref<2x64x128xbf16, #tpu.memory_space<vmem>>, %arg18: memref<2x1x128xf32, #tpu.memory_space<vmem>>, %arg19: memref<2x3x128xf32, #tpu.memory_space<vmem>>, %arg20: memref<2x3x128xf32, #tpu.memory_space<vmem>>, %arg21: memref<2x8x128xf32, #tpu.memory_space<vmem>>) attributes {dimension_semantics = [#tpu.dimension_semantics<parallel>], iteration_bounds = array<i64: 1>, scalar_prefetch = 0 : i64, scratch_operands = 0 : i64, tpu.core_type = #tpu.core_type<tc>, window_params = [{transform_indices = @transform_0, window_bounds = array<i64: 2, 8, 128>}, {transform_indices = @transform_1, window_bounds = array<i64: 2, 8, 128>}, {pipeline_mode = #tpu.pipeline_mode<synchronous>, transform_indices = @transform_2, window_bounds = array<i64: 16, 16>}, {pipeline_mode = #tpu.pipeline_mode<synchronous>, transform_indices = @transform_3, window_bounds = array<i64: 16, 16>}, {pipeline_mode = #tpu.pipeline_mode<synchronous>, transform_indices = @transform_4, window_bounds = array<i64: 2, 128, 96>}, {pipeline_mode = #tpu.pipeline_mode<synchronous>, transform_indices = @transform_5, window_bounds = array<i64: 2, 1, 96>}, {pipeline_mode = #tpu.pipeline_mode<synchronous>, transform_indices = @transform_6, window_bounds = array<i64: 2, 32, 128>}, {pipeline_mode = #tpu.pipeline_mode<synchronous>, transform_indices = @transform_7, window_bounds = array<i64: 2, 1, 128>}, {pipeline_mode = #tpu.pipeline_mode<synchronous>, transform_indices = @transform_8, window_bounds = array<i64: 2, 128, 32>}, {pipeline_mode = #tpu.pipeline_mode<synchronous>, transform_indices = @transform_9, window_bounds = array<i64: 2, 1, 32>}, {pipeline_mode = #tpu.pipeline_mode<synchronous>, transform_indices = @transform_10, window_bounds = array<i64: 2, 128, 64>}, {pipeline_mode = #tpu.pipeline_mode<synchronous>, transform_indices = @transform_11, window_bounds = array<i64: 2, 1, 64>}, {pipeline_mode = #tpu.pipeline_mode<synchronous>, transform_indices = @transform_12, window_bounds = array<i64: 2, 32, 128>}, {pipeline_mode = #tpu.pipeline_mode<synchronous>, transform_indices = @transform_13, window_bounds = array<i64: 2, 1, 128>}, {pipeline_mode = #tpu.pipeline_mode<synchronous>, transform_indices = @transform_14, window_bounds = array<i64: 2, 128, 64>}, {pipeline_mode = #tpu.pipeline_mode<synchronous>, transform_indices = @transform_15, window_bounds = array<i64: 2, 1, 64>}, {pipeline_mode = #tpu.pipeline_mode<synchronous>, transform_indices = @transform_16, window_bounds = array<i64: 2, 64, 128>}, {pipeline_mode = #tpu.pipeline_mode<synchronous>, transform_indices = @transform_17, window_bounds = array<i64: 2, 1, 128>}, {pipeline_mode = #tpu.pipeline_mode<synchronous>, transform_indices = @transform_18, window_bounds = array<i64: 2, 3, 128>}, {pipeline_mode = #tpu.pipeline_mode<synchronous>, transform_indices = @transform_19, window_bounds = array<i64: 2, 3, 128>}, {transform_indices = @transform_20, window_bounds = array<i64: 2, 8, 128>}]} {
    %c0 = arith.constant 0 : index
    %c0_0 = arith.constant 0 : index
    %c0_1 = arith.constant 0 : index
    %0 = vector.load %arg1[%c0, %c0_0, %c0_1] : memref<2x8x128xf32, #tpu.memory_space<vmem>>, vector<2x8x128xf32>
    %1 = vector.shape_cast %0 : vector<2x8x128xf32> to vector<16x128xf32>
    %c0_2 = arith.constant 0 : index
    %c0_3 = arith.constant 0 : index
    %c0_4 = arith.constant 0 : index
    %2 = vector.load %arg2[%c0_2, %c0_3, %c0_4] : memref<2x8x128xf32, #tpu.memory_space<vmem>>, vector<2x8x128xf32>
    %3 = vector.shape_cast %2 : vector<2x8x128xf32> to vector<16x128xf32>
    %4 = arith.truncf %3 : vector<16x128xf32> to vector<16x128xbf16>
    %c0_5 = arith.constant 0 : index
    %c0_6 = arith.constant 0 : index
    %5 = vector.load %arg3[%c0_5, %c0_6] : memref<16x16xf32, #tpu.memory_space<vmem>>, vector<16x16xf32>
    %c0_7 = arith.constant 0 : index
    %c0_8 = arith.constant 0 : index
    %6 = vector.load %arg4[%c0_7, %c0_8] : memref<16x16xf32, #tpu.memory_space<vmem>>, vector<16x16xf32>
    %c0_i32 = arith.constant 0 : i32
    %c2_i32 = arith.constant 2 : i32
    %7 = arith.addi %c0_i32, %c2_i32 : i32
    %c1_i32 = arith.constant 1 : i32
    %8 = scf.for %arg22 = %c0_i32 to %7 step %c1_i32 iter_args(%arg23 = %1) -> (vector<16x128xf32>)  : i32 {
      %11 = arith.index_cast %arg22 : i32 to index
      %c0_13 = arith.constant 0 : index
      %c0_14 = arith.constant 0 : index
      %12 = vector.load %arg19[%11, %c0_13, %c0_14] : memref<2x3x128xf32, #tpu.memory_space<vmem>>, vector<1x3x128xf32>
      %13 = vector.shape_cast %12 : vector<1x3x128xf32> to vector<3x128xf32>
      %14 = arith.index_cast %arg22 : i32 to index
      %c0_15 = arith.constant 0 : index
      %c0_16 = arith.constant 0 : index
      %15 = vector.load %arg20[%14, %c0_15, %c0_16] : memref<2x3x128xf32, #tpu.memory_space<vmem>>, vector<1x3x128xf32>
      %16 = vector.shape_cast %15 : vector<1x3x128xf32> to vector<3x128xf32>
      %17 = arith.truncf %arg23 : vector<16x128xf32> to vector<16x128xbf16>
      %18 = arith.index_cast %arg22 : i32 to index
      %c0_17 = arith.constant 0 : index
      %c0_18 = arith.constant 0 : index
      %19 = vector.load %arg5[%18, %c0_17, %c0_18] : memref<2x128x96xbf16, #tpu.memory_space<vmem>>, vector<1x128x96xbf16>
      %20 = vector.shape_cast %19 : vector<1x128x96xbf16> to vector<128x96xbf16>
      %cst = arith.constant dense<0.000000e+00> : vector<16x96xf32>
      %21 = tpu.matmul %17, %20, %cst {dimension_numbers = #tpu.dot_dimension_numbers<[1], [0], [0], [1], [0, 0, 1, 1], [], []>} : vector<16x128xbf16>, vector<128x96xbf16>, vector<16x96xf32> -> vector<16x96xf32>
      %22 = arith.index_cast %arg22 : i32 to index
      %c0_19 = arith.constant 0 : index
      %c0_20 = arith.constant 0 : index
      %23 = vector.load %arg6[%22, %c0_19, %c0_20] : memref<2x1x96xf32, #tpu.memory_space<vmem>>, vector<1x1x96xf32>
      %24 = vector.shape_cast %23 : vector<1x1x96xf32> to vector<1x96xf32>
      %25 = vector.broadcast %24 : vector<1x96xf32> to vector<16x96xf32>
      %26 = arith.addf %21, %25 : vector<16x96xf32>
      %27 = vector.extract_strided_slice %26 {offsets = [0, 0], sizes = [16, 32], strides = [1, 1]} : vector<16x96xf32> to vector<16x32xf32>
      %28 = vector.extract_strided_slice %26 {offsets = [0, 32], sizes = [16, 32], strides = [1, 1]} : vector<16x96xf32> to vector<16x32xf32>
      %29 = vector.extract_strided_slice %26 {offsets = [0, 64], sizes = [16, 32], strides = [1, 1]} : vector<16x96xf32> to vector<16x32xf32>
      %30 = arith.index_cast %arg22 : i32 to index
      %c0_21 = arith.constant 0 : index
      %c0_22 = arith.constant 0 : index
      %31 = vector.load %arg7[%30, %c0_21, %c0_22] : memref<2x32x128xbf16, #tpu.memory_space<vmem>>, vector<1x32x128xbf16>
      %32 = vector.shape_cast %31 : vector<1x32x128xbf16> to vector<32x128xbf16>
      %33 = arith.index_cast %arg22 : i32 to index
      %c0_23 = arith.constant 0 : index
      %c0_24 = arith.constant 0 : index
      %34 = vector.load %arg8[%33, %c0_23, %c0_24] : memref<2x1x128xf32, #tpu.memory_space<vmem>>, vector<1x1x128xf32>
      %35 = vector.shape_cast %34 : vector<1x1x128xf32> to vector<1x128xf32>
      %36 = arith.truncf %27 : vector<16x32xf32> to vector<16x32xbf16>
      %37 = arith.truncf %28 : vector<16x32xf32> to vector<16x32xbf16>
      %38 = arith.truncf %29 : vector<16x32xf32> to vector<16x32xbf16>
      %39 = vector.extract_strided_slice %36 {offsets = [0, 0], sizes = [16, 8], strides = [1, 1]} : vector<16x32xbf16> to vector<16x8xbf16>
      %40 = vector.extract_strided_slice %37 {offsets = [0, 0], sizes = [16, 8], strides = [1, 1]} : vector<16x32xbf16> to vector<16x8xbf16>
      %cst_25 = arith.constant dense<0.000000e+00> : vector<16x16xf32>
      %41 = tpu.matmul %39, %40, %cst_25 {dimension_numbers = #tpu.dot_dimension_numbers<[1], [1], [0], [0], [0, 0, 1, 0], [], []>} : vector<16x8xbf16>, vector<16x8xbf16>, vector<16x16xf32> -> vector<16x16xf32>
      %cst_26 = arith.constant 0.353553385 : f32
      %42 = vector.broadcast %cst_26 : f32 to vector<16x16xf32>
      %43 = arith.mulf %41, %42 : vector<16x16xf32>
      %44 = arith.addf %43, %5 : vector<16x16xf32>
      %cst_27 = arith.constant dense<0xFF800000> : vector<16xf32>
      %45 = vector.multi_reduction <maximumf>, %44, %cst_27 [1] : vector<16x16xf32> to vector<16xf32>
      %46 = vector.shape_cast %45 : vector<16xf32> to vector<16x1xf32>
      %47 = vector.broadcast %46 : vector<16x1xf32> to vector<16x16xf32>
      %48 = arith.subf %44, %47 : vector<16x16xf32>
      %49 = math.exp %48 : vector<16x16xf32>
      %cst_28 = arith.constant dense<0.000000e+00> : vector<16xf32>
      %50 = vector.multi_reduction <add>, %49, %cst_28 [1] : vector<16x16xf32> to vector<16xf32>
      %51 = vector.shape_cast %50 : vector<16xf32> to vector<16x1xf32>
      %52 = tpu.reciprocal %51 {approx = true} : vector<16x1xf32> -> vector<16x1xf32>
      %53 = vector.broadcast %52 : vector<16x1xf32> to vector<16x16xf32>
      %54 = arith.mulf %49, %53 : vector<16x16xf32>
      %55 = arith.truncf %54 : vector<16x16xf32> to vector<16x16xbf16>
      %56 = vector.extract_strided_slice %38 {offsets = [0, 0], sizes = [16, 8], strides = [1, 1]} : vector<16x32xbf16> to vector<16x8xbf16>
      %cst_29 = arith.constant dense<0.000000e+00> : vector<16x8xf32>
      %57 = tpu.matmul %55, %56, %cst_29 {dimension_numbers = #tpu.dot_dimension_numbers<[1], [0], [0], [1], [0, 0, 1, 1], [], []>} : vector<16x16xbf16>, vector<16x8xbf16>, vector<16x8xf32> -> vector<16x8xf32>
      %58 = vector.extract_strided_slice %36 {offsets = [0, 8], sizes = [16, 8], strides = [1, 1]} : vector<16x32xbf16> to vector<16x8xbf16>
      %59 = vector.extract_strided_slice %37 {offsets = [0, 8], sizes = [16, 8], strides = [1, 1]} : vector<16x32xbf16> to vector<16x8xbf16>
      %cst_30 = arith.constant dense<0.000000e+00> : vector<16x16xf32>
      %60 = tpu.matmul %58, %59, %cst_30 {dimension_numbers = #tpu.dot_dimension_numbers<[1], [1], [0], [0], [0, 0, 1, 0], [], []>} : vector<16x8xbf16>, vector<16x8xbf16>, vector<16x16xf32> -> vector<16x16xf32>
      %cst_31 = arith.constant 0.353553385 : f32
      %61 = vector.broadcast %cst_31 : f32 to vector<16x16xf32>
      %62 = arith.mulf %60, %61 : vector<16x16xf32>
      %63 = arith.addf %62, %5 : vector<16x16xf32>
      %cst_32 = arith.constant dense<0xFF800000> : vector<16xf32>
      %64 = vector.multi_reduction <maximumf>, %63, %cst_32 [1] : vector<16x16xf32> to vector<16xf32>
      %65 = vector.shape_cast %64 : vector<16xf32> to vector<16x1xf32>
      %66 = vector.broadcast %65 : vector<16x1xf32> to vector<16x16xf32>
      %67 = arith.subf %63, %66 : vector<16x16xf32>
      %68 = math.exp %67 : vector<16x16xf32>
      %cst_33 = arith.constant dense<0.000000e+00> : vector<16xf32>
      %69 = vector.multi_reduction <add>, %68, %cst_33 [1] : vector<16x16xf32> to vector<16xf32>
      %70 = vector.shape_cast %69 : vector<16xf32> to vector<16x1xf32>
      %71 = tpu.reciprocal %70 {approx = true} : vector<16x1xf32> -> vector<16x1xf32>
      %72 = vector.broadcast %71 : vector<16x1xf32> to vector<16x16xf32>
      %73 = arith.mulf %68, %72 : vector<16x16xf32>
      %74 = arith.truncf %73 : vector<16x16xf32> to vector<16x16xbf16>
      %75 = vector.extract_strided_slice %38 {offsets = [0, 8], sizes = [16, 8], strides = [1, 1]} : vector<16x32xbf16> to vector<16x8xbf16>
      %cst_34 = arith.constant dense<0.000000e+00> : vector<16x8xf32>
      %76 = tpu.matmul %74, %75, %cst_34 {dimension_numbers = #tpu.dot_dimension_numbers<[1], [0], [0], [1], [0, 0, 1, 1], [], []>} : vector<16x16xbf16>, vector<16x8xbf16>, vector<16x8xf32> -> vector<16x8xf32>
      %77 = vector.extract_strided_slice %36 {offsets = [0, 16], sizes = [16, 8], strides = [1, 1]} : vector<16x32xbf16> to vector<16x8xbf16>
      %78 = vector.extract_strided_slice %37 {offsets = [0, 16], sizes = [16, 8], strides = [1, 1]} : vector<16x32xbf16> to vector<16x8xbf16>
      %cst_35 = arith.constant dense<0.000000e+00> : vector<16x16xf32>
      %79 = tpu.matmul %77, %78, %cst_35 {dimension_numbers = #tpu.dot_dimension_numbers<[1], [1], [0], [0], [0, 0, 1, 0], [], []>} : vector<16x8xbf16>, vector<16x8xbf16>, vector<16x16xf32> -> vector<16x16xf32>
      %cst_36 = arith.constant 0.353553385 : f32
      %80 = vector.broadcast %cst_36 : f32 to vector<16x16xf32>
      %81 = arith.mulf %79, %80 : vector<16x16xf32>
      %82 = arith.addf %81, %5 : vector<16x16xf32>
      %cst_37 = arith.constant dense<0xFF800000> : vector<16xf32>
      %83 = vector.multi_reduction <maximumf>, %82, %cst_37 [1] : vector<16x16xf32> to vector<16xf32>
      %84 = vector.shape_cast %83 : vector<16xf32> to vector<16x1xf32>
      %85 = vector.broadcast %84 : vector<16x1xf32> to vector<16x16xf32>
      %86 = arith.subf %82, %85 : vector<16x16xf32>
      %87 = math.exp %86 : vector<16x16xf32>
      %cst_38 = arith.constant dense<0.000000e+00> : vector<16xf32>
      %88 = vector.multi_reduction <add>, %87, %cst_38 [1] : vector<16x16xf32> to vector<16xf32>
      %89 = vector.shape_cast %88 : vector<16xf32> to vector<16x1xf32>
      %90 = tpu.reciprocal %89 {approx = true} : vector<16x1xf32> -> vector<16x1xf32>
      %91 = vector.broadcast %90 : vector<16x1xf32> to vector<16x16xf32>
      %92 = arith.mulf %87, %91 : vector<16x16xf32>
      %93 = arith.truncf %92 : vector<16x16xf32> to vector<16x16xbf16>
      %94 = vector.extract_strided_slice %38 {offsets = [0, 16], sizes = [16, 8], strides = [1, 1]} : vector<16x32xbf16> to vector<16x8xbf16>
      %cst_39 = arith.constant dense<0.000000e+00> : vector<16x8xf32>
      %95 = tpu.matmul %93, %94, %cst_39 {dimension_numbers = #tpu.dot_dimension_numbers<[1], [0], [0], [1], [0, 0, 1, 1], [], []>} : vector<16x16xbf16>, vector<16x8xbf16>, vector<16x8xf32> -> vector<16x8xf32>
      %96 = vector.extract_strided_slice %36 {offsets = [0, 24], sizes = [16, 8], strides = [1, 1]} : vector<16x32xbf16> to vector<16x8xbf16>
      %97 = vector.extract_strided_slice %37 {offsets = [0, 24], sizes = [16, 8], strides = [1, 1]} : vector<16x32xbf16> to vector<16x8xbf16>
      %cst_40 = arith.constant dense<0.000000e+00> : vector<16x16xf32>
      %98 = tpu.matmul %96, %97, %cst_40 {dimension_numbers = #tpu.dot_dimension_numbers<[1], [1], [0], [0], [0, 0, 1, 0], [], []>} : vector<16x8xbf16>, vector<16x8xbf16>, vector<16x16xf32> -> vector<16x16xf32>
      %cst_41 = arith.constant 0.353553385 : f32
      %99 = vector.broadcast %cst_41 : f32 to vector<16x16xf32>
      %100 = arith.mulf %98, %99 : vector<16x16xf32>
      %101 = arith.addf %100, %5 : vector<16x16xf32>
      %cst_42 = arith.constant dense<0xFF800000> : vector<16xf32>
      %102 = vector.multi_reduction <maximumf>, %101, %cst_42 [1] : vector<16x16xf32> to vector<16xf32>
      %103 = vector.shape_cast %102 : vector<16xf32> to vector<16x1xf32>
      %104 = vector.broadcast %103 : vector<16x1xf32> to vector<16x16xf32>
      %105 = arith.subf %101, %104 : vector<16x16xf32>
      %106 = math.exp %105 : vector<16x16xf32>
      %cst_43 = arith.constant dense<0.000000e+00> : vector<16xf32>
      %107 = vector.multi_reduction <add>, %106, %cst_43 [1] : vector<16x16xf32> to vector<16xf32>
      %108 = vector.shape_cast %107 : vector<16xf32> to vector<16x1xf32>
      %109 = tpu.reciprocal %108 {approx = true} : vector<16x1xf32> -> vector<16x1xf32>
      %110 = vector.broadcast %109 : vector<16x1xf32> to vector<16x16xf32>
      %111 = arith.mulf %106, %110 : vector<16x16xf32>
      %112 = arith.truncf %111 : vector<16x16xf32> to vector<16x16xbf16>
      %113 = vector.extract_strided_slice %38 {offsets = [0, 24], sizes = [16, 8], strides = [1, 1]} : vector<16x32xbf16> to vector<16x8xbf16>
      %cst_44 = arith.constant dense<0.000000e+00> : vector<16x8xf32>
      %114 = tpu.matmul %112, %113, %cst_44 {dimension_numbers = #tpu.dot_dimension_numbers<[1], [0], [0], [1], [0, 0, 1, 1], [], []>} : vector<16x16xbf16>, vector<16x8xbf16>, vector<16x8xf32> -> vector<16x8xf32>
      %115 = tpu.concatenate %57, %76, %95, %114 in 1 : vector<16x8xf32>, vector<16x8xf32>, vector<16x8xf32>, vector<16x8xf32> -> vector<16x32xf32>
      %116 = arith.truncf %115 : vector<16x32xf32> to vector<16x32xbf16>
      %cst_45 = arith.constant dense<0.000000e+00> : vector<16x128xf32>
      %117 = tpu.matmul %116, %32, %cst_45 {dimension_numbers = #tpu.dot_dimension_numbers<[1], [0], [0], [1], [0, 0, 1, 1], [], []>} : vector<16x32xbf16>, vector<32x128xbf16>, vector<16x128xf32> -> vector<16x128xf32>
      %118 = vector.broadcast %35 : vector<1x128xf32> to vector<16x128xf32>
      %119 = arith.addf %117, %118 : vector<16x128xf32>
      %120 = arith.addf %arg23, %119 : vector<16x128xf32>
      %121 = vector.extract_strided_slice %13 {offsets = [0, 0], sizes = [1, 128], strides = [1, 1]} : vector<3x128xf32> to vector<1x128xf32>
      %122 = vector.extract_strided_slice %16 {offsets = [0, 0], sizes = [1, 128], strides = [1, 1]} : vector<3x128xf32> to vector<1x128xf32>
      %cst_46 = arith.constant dense<0.000000e+00> : vector<16xf32>
      %123 = vector.multi_reduction <add>, %120, %cst_46 [1] : vector<16x128xf32> to vector<16xf32>
      %124 = vector.shape_cast %123 : vector<16xf32> to vector<16x1xf32>
      %cst_47 = arith.constant 3.125000e-02 : f32
      %125 = vector.broadcast %cst_47 : f32 to vector<16x1xf32>
      %126 = arith.mulf %124, %125 : vector<16x1xf32>
      %127 = arith.mulf %120, %120 : vector<16x128xf32>
      %cst_48 = arith.constant dense<0.000000e+00> : vector<16xf32>
      %128 = vector.multi_reduction <add>, %127, %cst_48 [1] : vector<16x128xf32> to vector<16xf32>
      %129 = vector.shape_cast %128 : vector<16xf32> to vector<16x1xf32>
      %cst_49 = arith.constant 3.125000e-02 : f32
      %130 = vector.broadcast %cst_49 : f32 to vector<16x1xf32>
      %131 = arith.mulf %129, %130 : vector<16x1xf32>
      %132 = arith.mulf %126, %126 : vector<16x1xf32>
      %133 = arith.subf %131, %132 : vector<16x1xf32>
      %134 = vector.broadcast %126 : vector<16x1xf32> to vector<16x128xf32>
      %135 = arith.subf %120, %134 : vector<16x128xf32>
      %cst_50 = arith.constant 9.99999974E-6 : f32
      %136 = vector.broadcast %cst_50 : f32 to vector<16x1xf32>
      %137 = arith.addf %133, %136 : vector<16x1xf32>
      %138 = math.rsqrt %137 : vector<16x1xf32>
      %139 = vector.broadcast %138 : vector<16x1xf32> to vector<16x128xf32>
      %140 = arith.mulf %135, %139 : vector<16x128xf32>
      %141 = vector.broadcast %121 : vector<1x128xf32> to vector<16x128xf32>
      %142 = arith.mulf %140, %141 : vector<16x128xf32>
      %143 = vector.broadcast %122 : vector<1x128xf32> to vector<16x128xf32>
      %144 = arith.addf %142, %143 : vector<16x128xf32>
      %145 = arith.truncf %144 : vector<16x128xf32> to vector<16x128xbf16>
      %146 = arith.index_cast %arg22 : i32 to index
      %c0_51 = arith.constant 0 : index
      %c0_52 = arith.constant 0 : index
      %147 = vector.load %arg9[%146, %c0_51, %c0_52] : memref<2x128x32xbf16, #tpu.memory_space<vmem>>, vector<1x128x32xbf16>
      %148 = vector.shape_cast %147 : vector<1x128x32xbf16> to vector<128x32xbf16>
      %cst_53 = arith.constant dense<0.000000e+00> : vector<16x32xf32>
      %149 = tpu.matmul %145, %148, %cst_53 {dimension_numbers = #tpu.dot_dimension_numbers<[1], [0], [0], [1], [0, 0, 1, 1], [], []>} : vector<16x128xbf16>, vector<128x32xbf16>, vector<16x32xf32> -> vector<16x32xf32>
      %150 = arith.index_cast %arg22 : i32 to index
      %c0_54 = arith.constant 0 : index
      %c0_55 = arith.constant 0 : index
      %151 = vector.load %arg10[%150, %c0_54, %c0_55] : memref<2x1x32xf32, #tpu.memory_space<vmem>>, vector<1x1x32xf32>
      %152 = vector.shape_cast %151 : vector<1x1x32xf32> to vector<1x32xf32>
      %153 = vector.broadcast %152 : vector<1x32xf32> to vector<16x32xf32>
      %154 = arith.addf %149, %153 : vector<16x32xf32>
      %155 = arith.index_cast %arg22 : i32 to index
      %c0_56 = arith.constant 0 : index
      %c0_57 = arith.constant 0 : index
      %156 = vector.load %arg11[%155, %c0_56, %c0_57] : memref<2x128x64xbf16, #tpu.memory_space<vmem>>, vector<1x128x64xbf16>
      %157 = vector.shape_cast %156 : vector<1x128x64xbf16> to vector<128x64xbf16>
      %cst_58 = arith.constant dense<0.000000e+00> : vector<16x64xf32>
      %158 = tpu.matmul %4, %157, %cst_58 {dimension_numbers = #tpu.dot_dimension_numbers<[1], [0], [0], [1], [0, 0, 1, 1], [], []>} : vector<16x128xbf16>, vector<128x64xbf16>, vector<16x64xf32> -> vector<16x64xf32>
      %159 = arith.index_cast %arg22 : i32 to index
      %c0_59 = arith.constant 0 : index
      %c0_60 = arith.constant 0 : index
      %160 = vector.load %arg12[%159, %c0_59, %c0_60] : memref<2x1x64xf32, #tpu.memory_space<vmem>>, vector<1x1x64xf32>
      %161 = vector.shape_cast %160 : vector<1x1x64xf32> to vector<1x64xf32>
      %162 = vector.broadcast %161 : vector<1x64xf32> to vector<16x64xf32>
      %163 = arith.addf %158, %162 : vector<16x64xf32>
      %164 = vector.extract_strided_slice %163 {offsets = [0, 0], sizes = [16, 32], strides = [1, 1]} : vector<16x64xf32> to vector<16x32xf32>
      %165 = vector.extract_strided_slice %163 {offsets = [0, 32], sizes = [16, 32], strides = [1, 1]} : vector<16x64xf32> to vector<16x32xf32>
      %166 = arith.index_cast %arg22 : i32 to index
      %c0_61 = arith.constant 0 : index
      %c0_62 = arith.constant 0 : index
      %167 = vector.load %arg13[%166, %c0_61, %c0_62] : memref<2x32x128xbf16, #tpu.memory_space<vmem>>, vector<1x32x128xbf16>
      %168 = vector.shape_cast %167 : vector<1x32x128xbf16> to vector<32x128xbf16>
      %169 = arith.index_cast %arg22 : i32 to index
      %c0_63 = arith.constant 0 : index
      %c0_64 = arith.constant 0 : index
      %170 = vector.load %arg14[%169, %c0_63, %c0_64] : memref<2x1x128xf32, #tpu.memory_space<vmem>>, vector<1x1x128xf32>
      %171 = vector.shape_cast %170 : vector<1x1x128xf32> to vector<1x128xf32>
      %172 = arith.truncf %154 : vector<16x32xf32> to vector<16x32xbf16>
      %173 = arith.truncf %164 : vector<16x32xf32> to vector<16x32xbf16>
      %174 = arith.truncf %165 : vector<16x32xf32> to vector<16x32xbf16>
      %175 = vector.extract_strided_slice %172 {offsets = [0, 0], sizes = [16, 8], strides = [1, 1]} : vector<16x32xbf16> to vector<16x8xbf16>
      %176 = vector.extract_strided_slice %173 {offsets = [0, 0], sizes = [16, 8], strides = [1, 1]} : vector<16x32xbf16> to vector<16x8xbf16>
      %cst_65 = arith.constant dense<0.000000e+00> : vector<16x16xf32>
      %177 = tpu.matmul %175, %176, %cst_65 {dimension_numbers = #tpu.dot_dimension_numbers<[1], [1], [0], [0], [0, 0, 1, 0], [], []>} : vector<16x8xbf16>, vector<16x8xbf16>, vector<16x16xf32> -> vector<16x16xf32>
      %cst_66 = arith.constant 0.353553385 : f32
      %178 = vector.broadcast %cst_66 : f32 to vector<16x16xf32>
      %179 = arith.mulf %177, %178 : vector<16x16xf32>
      %180 = arith.addf %179, %6 : vector<16x16xf32>
      %cst_67 = arith.constant dense<0xFF800000> : vector<16xf32>
      %181 = vector.multi_reduction <maximumf>, %180, %cst_67 [1] : vector<16x16xf32> to vector<16xf32>
      %182 = vector.shape_cast %181 : vector<16xf32> to vector<16x1xf32>
      %183 = vector.broadcast %182 : vector<16x1xf32> to vector<16x16xf32>
      %184 = arith.subf %180, %183 : vector<16x16xf32>
      %185 = math.exp %184 : vector<16x16xf32>
      %cst_68 = arith.constant dense<0.000000e+00> : vector<16xf32>
      %186 = vector.multi_reduction <add>, %185, %cst_68 [1] : vector<16x16xf32> to vector<16xf32>
      %187 = vector.shape_cast %186 : vector<16xf32> to vector<16x1xf32>
      %188 = tpu.reciprocal %187 {approx = true} : vector<16x1xf32> -> vector<16x1xf32>
      %189 = vector.broadcast %188 : vector<16x1xf32> to vector<16x16xf32>
      %190 = arith.mulf %185, %189 : vector<16x16xf32>
      %191 = arith.truncf %190 : vector<16x16xf32> to vector<16x16xbf16>
      %192 = vector.extract_strided_slice %174 {offsets = [0, 0], sizes = [16, 8], strides = [1, 1]} : vector<16x32xbf16> to vector<16x8xbf16>
      %cst_69 = arith.constant dense<0.000000e+00> : vector<16x8xf32>
      %193 = tpu.matmul %191, %192, %cst_69 {dimension_numbers = #tpu.dot_dimension_numbers<[1], [0], [0], [1], [0, 0, 1, 1], [], []>} : vector<16x16xbf16>, vector<16x8xbf16>, vector<16x8xf32> -> vector<16x8xf32>
      %194 = vector.extract_strided_slice %172 {offsets = [0, 8], sizes = [16, 8], strides = [1, 1]} : vector<16x32xbf16> to vector<16x8xbf16>
      %195 = vector.extract_strided_slice %173 {offsets = [0, 8], sizes = [16, 8], strides = [1, 1]} : vector<16x32xbf16> to vector<16x8xbf16>
      %cst_70 = arith.constant dense<0.000000e+00> : vector<16x16xf32>
      %196 = tpu.matmul %194, %195, %cst_70 {dimension_numbers = #tpu.dot_dimension_numbers<[1], [1], [0], [0], [0, 0, 1, 0], [], []>} : vector<16x8xbf16>, vector<16x8xbf16>, vector<16x16xf32> -> vector<16x16xf32>
      %cst_71 = arith.constant 0.353553385 : f32
      %197 = vector.broadcast %cst_71 : f32 to vector<16x16xf32>
      %198 = arith.mulf %196, %197 : vector<16x16xf32>
      %199 = arith.addf %198, %6 : vector<16x16xf32>
      %cst_72 = arith.constant dense<0xFF800000> : vector<16xf32>
      %200 = vector.multi_reduction <maximumf>, %199, %cst_72 [1] : vector<16x16xf32> to vector<16xf32>
      %201 = vector.shape_cast %200 : vector<16xf32> to vector<16x1xf32>
      %202 = vector.broadcast %201 : vector<16x1xf32> to vector<16x16xf32>
      %203 = arith.subf %199, %202 : vector<16x16xf32>
      %204 = math.exp %203 : vector<16x16xf32>
      %cst_73 = arith.constant dense<0.000000e+00> : vector<16xf32>
      %205 = vector.multi_reduction <add>, %204, %cst_73 [1] : vector<16x16xf32> to vector<16xf32>
      %206 = vector.shape_cast %205 : vector<16xf32> to vector<16x1xf32>
      %207 = tpu.reciprocal %206 {approx = true} : vector<16x1xf32> -> vector<16x1xf32>
      %208 = vector.broadcast %207 : vector<16x1xf32> to vector<16x16xf32>
      %209 = arith.mulf %204, %208 : vector<16x16xf32>
      %210 = arith.truncf %209 : vector<16x16xf32> to vector<16x16xbf16>
      %211 = vector.extract_strided_slice %174 {offsets = [0, 8], sizes = [16, 8], strides = [1, 1]} : vector<16x32xbf16> to vector<16x8xbf16>
      %cst_74 = arith.constant dense<0.000000e+00> : vector<16x8xf32>
      %212 = tpu.matmul %210, %211, %cst_74 {dimension_numbers = #tpu.dot_dimension_numbers<[1], [0], [0], [1], [0, 0, 1, 1], [], []>} : vector<16x16xbf16>, vector<16x8xbf16>, vector<16x8xf32> -> vector<16x8xf32>
      %213 = vector.extract_strided_slice %172 {offsets = [0, 16], sizes = [16, 8], strides = [1, 1]} : vector<16x32xbf16> to vector<16x8xbf16>
      %214 = vector.extract_strided_slice %173 {offsets = [0, 16], sizes = [16, 8], strides = [1, 1]} : vector<16x32xbf16> to vector<16x8xbf16>
      %cst_75 = arith.constant dense<0.000000e+00> : vector<16x16xf32>
      %215 = tpu.matmul %213, %214, %cst_75 {dimension_numbers = #tpu.dot_dimension_numbers<[1], [1], [0], [0], [0, 0, 1, 0], [], []>} : vector<16x8xbf16>, vector<16x8xbf16>, vector<16x16xf32> -> vector<16x16xf32>
      %cst_76 = arith.constant 0.353553385 : f32
      %216 = vector.broadcast %cst_76 : f32 to vector<16x16xf32>
      %217 = arith.mulf %215, %216 : vector<16x16xf32>
      %218 = arith.addf %217, %6 : vector<16x16xf32>
      %cst_77 = arith.constant dense<0xFF800000> : vector<16xf32>
      %219 = vector.multi_reduction <maximumf>, %218, %cst_77 [1] : vector<16x16xf32> to vector<16xf32>
      %220 = vector.shape_cast %219 : vector<16xf32> to vector<16x1xf32>
      %221 = vector.broadcast %220 : vector<16x1xf32> to vector<16x16xf32>
      %222 = arith.subf %218, %221 : vector<16x16xf32>
      %223 = math.exp %222 : vector<16x16xf32>
      %cst_78 = arith.constant dense<0.000000e+00> : vector<16xf32>
      %224 = vector.multi_reduction <add>, %223, %cst_78 [1] : vector<16x16xf32> to vector<16xf32>
      %225 = vector.shape_cast %224 : vector<16xf32> to vector<16x1xf32>
      %226 = tpu.reciprocal %225 {approx = true} : vector<16x1xf32> -> vector<16x1xf32>
      %227 = vector.broadcast %226 : vector<16x1xf32> to vector<16x16xf32>
      %228 = arith.mulf %223, %227 : vector<16x16xf32>
      %229 = arith.truncf %228 : vector<16x16xf32> to vector<16x16xbf16>
      %230 = vector.extract_strided_slice %174 {offsets = [0, 16], sizes = [16, 8], strides = [1, 1]} : vector<16x32xbf16> to vector<16x8xbf16>
      %cst_79 = arith.constant dense<0.000000e+00> : vector<16x8xf32>
      %231 = tpu.matmul %229, %230, %cst_79 {dimension_numbers = #tpu.dot_dimension_numbers<[1], [0], [0], [1], [0, 0, 1, 1], [], []>} : vector<16x16xbf16>, vector<16x8xbf16>, vector<16x8xf32> -> vector<16x8xf32>
      %232 = vector.extract_strided_slice %172 {offsets = [0, 24], sizes = [16, 8], strides = [1, 1]} : vector<16x32xbf16> to vector<16x8xbf16>
      %233 = vector.extract_strided_slice %173 {offsets = [0, 24], sizes = [16, 8], strides = [1, 1]} : vector<16x32xbf16> to vector<16x8xbf16>
      %cst_80 = arith.constant dense<0.000000e+00> : vector<16x16xf32>
      %234 = tpu.matmul %232, %233, %cst_80 {dimension_numbers = #tpu.dot_dimension_numbers<[1], [1], [0], [0], [0, 0, 1, 0], [], []>} : vector<16x8xbf16>, vector<16x8xbf16>, vector<16x16xf32> -> vector<16x16xf32>
      %cst_81 = arith.constant 0.353553385 : f32
      %235 = vector.broadcast %cst_81 : f32 to vector<16x16xf32>
      %236 = arith.mulf %234, %235 : vector<16x16xf32>
      %237 = arith.addf %236, %6 : vector<16x16xf32>
      %cst_82 = arith.constant dense<0xFF800000> : vector<16xf32>
      %238 = vector.multi_reduction <maximumf>, %237, %cst_82 [1] : vector<16x16xf32> to vector<16xf32>
      %239 = vector.shape_cast %238 : vector<16xf32> to vector<16x1xf32>
      %240 = vector.broadcast %239 : vector<16x1xf32> to vector<16x16xf32>
      %241 = arith.subf %237, %240 : vector<16x16xf32>
      %242 = math.exp %241 : vector<16x16xf32>
      %cst_83 = arith.constant dense<0.000000e+00> : vector<16xf32>
      %243 = vector.multi_reduction <add>, %242, %cst_83 [1] : vector<16x16xf32> to vector<16xf32>
      %244 = vector.shape_cast %243 : vector<16xf32> to vector<16x1xf32>
      %245 = tpu.reciprocal %244 {approx = true} : vector<16x1xf32> -> vector<16x1xf32>
      %246 = vector.broadcast %245 : vector<16x1xf32> to vector<16x16xf32>
      %247 = arith.mulf %242, %246 : vector<16x16xf32>
      %248 = arith.truncf %247 : vector<16x16xf32> to vector<16x16xbf16>
      %249 = vector.extract_strided_slice %174 {offsets = [0, 24], sizes = [16, 8], strides = [1, 1]} : vector<16x32xbf16> to vector<16x8xbf16>
      %cst_84 = arith.constant dense<0.000000e+00> : vector<16x8xf32>
      %250 = tpu.matmul %248, %249, %cst_84 {dimension_numbers = #tpu.dot_dimension_numbers<[1], [0], [0], [1], [0, 0, 1, 1], [], []>} : vector<16x16xbf16>, vector<16x8xbf16>, vector<16x8xf32> -> vector<16x8xf32>
      %251 = tpu.concatenate %193, %212, %231, %250 in 1 : vector<16x8xf32>, vector<16x8xf32>, vector<16x8xf32>, vector<16x8xf32> -> vector<16x32xf32>
      %252 = arith.truncf %251 : vector<16x32xf32> to vector<16x32xbf16>
      %cst_85 = arith.constant dense<0.000000e+00> : vector<16x128xf32>
      %253 = tpu.matmul %252, %168, %cst_85 {dimension_numbers = #tpu.dot_dimension_numbers<[1], [0], [0], [1], [0, 0, 1, 1], [], []>} : vector<16x32xbf16>, vector<32x128xbf16>, vector<16x128xf32> -> vector<16x128xf32>
      %254 = vector.broadcast %171 : vector<1x128xf32> to vector<16x128xf32>
      %255 = arith.addf %253, %254 : vector<16x128xf32>
      %256 = arith.addf %144, %255 : vector<16x128xf32>
      %257 = vector.extract_strided_slice %13 {offsets = [1, 0], sizes = [1, 128], strides = [1, 1]} : vector<3x128xf32> to vector<1x128xf32>
      %258 = vector.extract_strided_slice %16 {offsets = [1, 0], sizes = [1, 128], strides = [1, 1]} : vector<3x128xf32> to vector<1x128xf32>
      %cst_86 = arith.constant dense<0.000000e+00> : vector<16xf32>
      %259 = vector.multi_reduction <add>, %256, %cst_86 [1] : vector<16x128xf32> to vector<16xf32>
      %260 = vector.shape_cast %259 : vector<16xf32> to vector<16x1xf32>
      %cst_87 = arith.constant 3.125000e-02 : f32
      %261 = vector.broadcast %cst_87 : f32 to vector<16x1xf32>
      %262 = arith.mulf %260, %261 : vector<16x1xf32>
      %263 = arith.mulf %256, %256 : vector<16x128xf32>
      %cst_88 = arith.constant dense<0.000000e+00> : vector<16xf32>
      %264 = vector.multi_reduction <add>, %263, %cst_88 [1] : vector<16x128xf32> to vector<16xf32>
      %265 = vector.shape_cast %264 : vector<16xf32> to vector<16x1xf32>
      %cst_89 = arith.constant 3.125000e-02 : f32
      %266 = vector.broadcast %cst_89 : f32 to vector<16x1xf32>
      %267 = arith.mulf %265, %266 : vector<16x1xf32>
      %268 = arith.mulf %262, %262 : vector<16x1xf32>
      %269 = arith.subf %267, %268 : vector<16x1xf32>
      %270 = vector.broadcast %262 : vector<16x1xf32> to vector<16x128xf32>
      %271 = arith.subf %256, %270 : vector<16x128xf32>
      %cst_90 = arith.constant 9.99999974E-6 : f32
      %272 = vector.broadcast %cst_90 : f32 to vector<16x1xf32>
      %273 = arith.addf %269, %272 : vector<16x1xf32>
      %274 = math.rsqrt %273 : vector<16x1xf32>
      %275 = vector.broadcast %274 : vector<16x1xf32> to vector<16x128xf32>
      %276 = arith.mulf %271, %275 : vector<16x128xf32>
      %277 = vector.broadcast %257 : vector<1x128xf32> to vector<16x128xf32>
      %278 = arith.mulf %276, %277 : vector<16x128xf32>
      %279 = vector.broadcast %258 : vector<1x128xf32> to vector<16x128xf32>
      %280 = arith.addf %278, %279 : vector<16x128xf32>
      %281 = arith.truncf %280 : vector<16x128xf32> to vector<16x128xbf16>
      %282 = arith.index_cast %arg22 : i32 to index
      %c0_91 = arith.constant 0 : index
      %c0_92 = arith.constant 0 : index
      %283 = vector.load %arg15[%282, %c0_91, %c0_92] : memref<2x128x64xbf16, #tpu.memory_space<vmem>>, vector<1x128x64xbf16>
      %284 = vector.shape_cast %283 : vector<1x128x64xbf16> to vector<128x64xbf16>
      %cst_93 = arith.constant dense<0.000000e+00> : vector<16x64xf32>
      %285 = tpu.matmul %281, %284, %cst_93 {dimension_numbers = #tpu.dot_dimension_numbers<[1], [0], [0], [1], [0, 0, 1, 1], [], []>} : vector<16x128xbf16>, vector<128x64xbf16>, vector<16x64xf32> -> vector<16x64xf32>
      %286 = arith.index_cast %arg22 : i32 to index
      %c0_94 = arith.constant 0 : index
      %c0_95 = arith.constant 0 : index
      %287 = vector.load %arg16[%286, %c0_94, %c0_95] : memref<2x1x64xf32, #tpu.memory_space<vmem>>, vector<1x1x64xf32>
      %288 = vector.shape_cast %287 : vector<1x1x64xf32> to vector<1x64xf32>
      %289 = vector.broadcast %288 : vector<1x64xf32> to vector<16x64xf32>
      %290 = arith.addf %285, %289 : vector<16x64xf32>
      %cst_96 = arith.constant 0.000000e+00 : f32
      %291 = vector.broadcast %cst_96 : f32 to vector<16x64xf32>
      %292 = arith.maximumf %290, %291 : vector<16x64xf32>
      %293 = arith.truncf %292 : vector<16x64xf32> to vector<16x64xbf16>
      %294 = arith.index_cast %arg22 : i32 to index
      %c0_97 = arith.constant 0 : index
      %c0_98 = arith.constant 0 : index
      %295 = vector.load %arg17[%294, %c0_97, %c0_98] : memref<2x64x128xbf16, #tpu.memory_space<vmem>>, vector<1x64x128xbf16>
      %296 = vector.shape_cast %295 : vector<1x64x128xbf16> to vector<64x128xbf16>
      %cst_99 = arith.constant dense<0.000000e+00> : vector<16x128xf32>
      %297 = tpu.matmul %293, %296, %cst_99 {dimension_numbers = #tpu.dot_dimension_numbers<[1], [0], [0], [1], [0, 0, 1, 1], [], []>} : vector<16x64xbf16>, vector<64x128xbf16>, vector<16x128xf32> -> vector<16x128xf32>
      %298 = arith.index_cast %arg22 : i32 to index
      %c0_100 = arith.constant 0 : index
      %c0_101 = arith.constant 0 : index
      %299 = vector.load %arg18[%298, %c0_100, %c0_101] : memref<2x1x128xf32, #tpu.memory_space<vmem>>, vector<1x1x128xf32>
      %300 = vector.shape_cast %299 : vector<1x1x128xf32> to vector<1x128xf32>
      %301 = vector.broadcast %300 : vector<1x128xf32> to vector<16x128xf32>
      %302 = arith.addf %297, %301 : vector<16x128xf32>
      %303 = arith.addf %280, %302 : vector<16x128xf32>
      %304 = vector.extract_strided_slice %13 {offsets = [2, 0], sizes = [1, 128], strides = [1, 1]} : vector<3x128xf32> to vector<1x128xf32>
      %305 = vector.extract_strided_slice %16 {offsets = [2, 0], sizes = [1, 128], strides = [1, 1]} : vector<3x128xf32> to vector<1x128xf32>
      %cst_102 = arith.constant dense<0.000000e+00> : vector<16xf32>
      %306 = vector.multi_reduction <add>, %303, %cst_102 [1] : vector<16x128xf32> to vector<16xf32>
      %307 = vector.shape_cast %306 : vector<16xf32> to vector<16x1xf32>
      %cst_103 = arith.constant 3.125000e-02 : f32
      %308 = vector.broadcast %cst_103 : f32 to vector<16x1xf32>
      %309 = arith.mulf %307, %308 : vector<16x1xf32>
      %310 = arith.mulf %303, %303 : vector<16x128xf32>
      %cst_104 = arith.constant dense<0.000000e+00> : vector<16xf32>
      %311 = vector.multi_reduction <add>, %310, %cst_104 [1] : vector<16x128xf32> to vector<16xf32>
      %312 = vector.shape_cast %311 : vector<16xf32> to vector<16x1xf32>
      %cst_105 = arith.constant 3.125000e-02 : f32
      %313 = vector.broadcast %cst_105 : f32 to vector<16x1xf32>
      %314 = arith.mulf %312, %313 : vector<16x1xf32>
      %315 = arith.mulf %309, %309 : vector<16x1xf32>
      %316 = arith.subf %314, %315 : vector<16x1xf32>
      %317 = vector.broadcast %309 : vector<16x1xf32> to vector<16x128xf32>
      %318 = arith.subf %303, %317 : vector<16x128xf32>
      %cst_106 = arith.constant 9.99999974E-6 : f32
      %319 = vector.broadcast %cst_106 : f32 to vector<16x1xf32>
      %320 = arith.addf %316, %319 : vector<16x1xf32>
      %321 = math.rsqrt %320 : vector<16x1xf32>
      %322 = vector.broadcast %321 : vector<16x1xf32> to vector<16x128xf32>
      %323 = arith.mulf %318, %322 : vector<16x128xf32>
      %324 = vector.broadcast %304 : vector<1x128xf32> to vector<16x128xf32>
      %325 = arith.mulf %323, %324 : vector<16x128xf32>
      %326 = vector.broadcast %305 : vector<1x128xf32> to vector<16x128xf32>
      %327 = arith.addf %325, %326 : vector<16x128xf32>
      scf.yield %327 : vector<16x128xf32>
    }
    %c2_i32_9 = arith.constant 2 : i32
    %9 = vector.shape_cast %8 : vector<16x128xf32> to vector<2x8x128xf32>
    %c0_10 = arith.constant 0 : index
    %c0_11 = arith.constant 0 : index
    %c0_12 = arith.constant 0 : index
    %10 = vector.load %arg21[%c0_10, %c0_11, %c0_12] : memref<2x8x128xf32, #tpu.memory_space<vmem>>, vector<2x8x128xf32>
    tpu.vector_store %arg21[%c0_10, %c0_11, %c0_12], %9 {strides = array<i32>} : memref<2x8x128xf32, #tpu.memory_space<vmem>>, vector<2x8x128xf32>,
    return
  }
  func.func @transform_0(%arg0: i32) -> (i32, i32, i32) {
    %c0_i32 = arith.constant 0 : i32
    %c0_i32_0 = arith.constant 0 : i32
    %c0_i32_1 = arith.constant 0 : i32
    return %arg0, %c0_i32, %c0_i32_0 : i32, i32, i32
  }
  func.func @transform_1(%arg0: i32) -> (i32, i32, i32) {
    %c0_i32 = arith.constant 0 : i32
    %c0_i32_0 = arith.constant 0 : i32
    %c0_i32_1 = arith.constant 0 : i32
    return %arg0, %c0_i32, %c0_i32_0 : i32, i32, i32
  }
  func.func @transform_2(%arg0: i32) -> (i32, i32) {
    %c0_i32 = arith.constant 0 : i32
    %c0_i32_0 = arith.constant 0 : i32
    %c0_i32_1 = arith.constant 0 : i32
    return %c0_i32, %c0_i32_0 : i32, i32
  }
  func.func @transform_3(%arg0: i32) -> (i32, i32) {
    %c0_i32 = arith.constant 0 : i32
    %c0_i32_0 = arith.constant 0 : i32
    %c0_i32_1 = arith.constant 0 : i32
    return %c0_i32, %c0_i32_0 : i32, i32
  }
  func.func @transform_4(%arg0: i32) -> (i32, i32, i32) {
    %c0_i32 = arith.constant 0 : i32
    %c0_i32_0 = arith.constant 0 : i32
    %c0_i32_1 = arith.constant 0 : i32
    %c0_i32_2 = arith.constant 0 : i32
    return %c0_i32, %c0_i32_0, %c0_i32_1 : i32, i32, i32
  }
  func.func @transform_5(%arg0: i32) -> (i32, i32, i32) {
    %c0_i32 = arith.constant 0 : i32
    %c0_i32_0 = arith.constant 0 : i32
    %c0_i32_1 = arith.constant 0 : i32
    %c0_i32_2 = arith.constant 0 : i32
    return %c0_i32, %c0_i32_0, %c0_i32_1 : i32, i32, i32
  }
  func.func @transform_6(%arg0: i32) -> (i32, i32, i32) {
    %c0_i32 = arith.constant 0 : i32
    %c0_i32_0 = arith.constant 0 : i32
    %c0_i32_1 = arith.constant 0 : i32
    %c0_i32_2 = arith.constant 0 : i32
    return %c0_i32, %c0_i32_0, %c0_i32_1 : i32, i32, i32
  }
  func.func @transform_7(%arg0: i32) -> (i32, i32, i32) {
    %c0_i32 = arith.constant 0 : i32
    %c0_i32_0 = arith.constant 0 : i32
    %c0_i32_1 = arith.constant 0 : i32
    %c0_i32_2 = arith.constant 0 : i32
    return %c0_i32, %c0_i32_0, %c0_i32_1 : i32, i32, i32
  }
  func.func @transform_8(%arg0: i32) -> (i32, i32, i32) {
    %c0_i32 = arith.constant 0 : i32
    %c0_i32_0 = arith.constant 0 : i32
    %c0_i32_1 = arith.constant 0 : i32
    %c0_i32_2 = arith.constant 0 : i32
    return %c0_i32, %c0_i32_0, %c0_i32_1 : i32, i32, i32
  }
  func.func @transform_9(%arg0: i32) -> (i32, i32, i32) {
    %c0_i32 = arith.constant 0 : i32
    %c0_i32_0 = arith.constant 0 : i32
    %c0_i32_1 = arith.constant 0 : i32
    %c0_i32_2 = arith.constant 0 : i32
    return %c0_i32, %c0_i32_0, %c0_i32_1 : i32, i32, i32
  }
  func.func @transform_10(%arg0: i32) -> (i32, i32, i32) {
    %c0_i32 = arith.constant 0 : i32
    %c0_i32_0 = arith.constant 0 : i32
    %c0_i32_1 = arith.constant 0 : i32
    %c0_i32_2 = arith.constant 0 : i32
    return %c0_i32, %c0_i32_0, %c0_i32_1 : i32, i32, i32
  }
  func.func @transform_11(%arg0: i32) -> (i32, i32, i32) {
    %c0_i32 = arith.constant 0 : i32
    %c0_i32_0 = arith.constant 0 : i32
    %c0_i32_1 = arith.constant 0 : i32
    %c0_i32_2 = arith.constant 0 : i32
    return %c0_i32, %c0_i32_0, %c0_i32_1 : i32, i32, i32
  }
  func.func @transform_12(%arg0: i32) -> (i32, i32, i32) {
    %c0_i32 = arith.constant 0 : i32
    %c0_i32_0 = arith.constant 0 : i32
    %c0_i32_1 = arith.constant 0 : i32
    %c0_i32_2 = arith.constant 0 : i32
    return %c0_i32, %c0_i32_0, %c0_i32_1 : i32, i32, i32
  }
  func.func @transform_13(%arg0: i32) -> (i32, i32, i32) {
    %c0_i32 = arith.constant 0 : i32
    %c0_i32_0 = arith.constant 0 : i32
    %c0_i32_1 = arith.constant 0 : i32
    %c0_i32_2 = arith.constant 0 : i32
    return %c0_i32, %c0_i32_0, %c0_i32_1 : i32, i32, i32
  }
  func.func @transform_14(%arg0: i32) -> (i32, i32, i32) {
    %c0_i32 = arith.constant 0 : i32
    %c0_i32_0 = arith.constant 0 : i32
    %c0_i32_1 = arith.constant 0 : i32
    %c0_i32_2 = arith.constant 0 : i32
    return %c0_i32, %c0_i32_0, %c0_i32_1 : i32, i32, i32
  }
  func.func @transform_15(%arg0: i32) -> (i32, i32, i32) {
    %c0_i32 = arith.constant 0 : i32
    %c0_i32_0 = arith.constant 0 : i32
    %c0_i32_1 = arith.constant 0 : i32
    %c0_i32_2 = arith.constant 0 : i32
    return %c0_i32, %c0_i32_0, %c0_i32_1 : i32, i32, i32
  }
  func.func @transform_16(%arg0: i32) -> (i32, i32, i32) {
    %c0_i32 = arith.constant 0 : i32
    %c0_i32_0 = arith.constant 0 : i32
    %c0_i32_1 = arith.constant 0 : i32
    %c0_i32_2 = arith.constant 0 : i32
    return %c0_i32, %c0_i32_0, %c0_i32_1 : i32, i32, i32
  }
  func.func @transform_17(%arg0: i32) -> (i32, i32, i32) {
    %c0_i32 = arith.constant 0 : i32
    %c0_i32_0 = arith.constant 0 : i32
    %c0_i32_1 = arith.constant 0 : i32
    %c0_i32_2 = arith.constant 0 : i32
    return %c0_i32, %c0_i32_0, %c0_i32_1 : i32, i32, i32
  }
  func.func @transform_18(%arg0: i32) -> (i32, i32, i32) {
    %c0_i32 = arith.constant 0 : i32
    %c0_i32_0 = arith.constant 0 : i32
    %c0_i32_1 = arith.constant 0 : i32
    %c0_i32_2 = arith.constant 0 : i32
    return %c0_i32, %c0_i32_0, %c0_i32_1 : i32, i32, i32
  }
  func.func @transform_19(%arg0: i32) -> (i32, i32, i32) {
    %c0_i32 = arith.constant 0 : i32
    %c0_i32_0 = arith.constant 0 : i32
    %c0_i32_1 = arith.constant 0 : i32
    %c0_i32_2 = arith.constant 0 : i32
    return %c0_i32, %c0_i32_0, %c0_i32_1 : i32, i32, i32
  }
  func.func @transform_20(%arg0: i32) -> (i32, i32, i32) {
    %c0_i32 = arith.constant 0 : i32
    %c0_i32_0 = arith.constant 0 : i32
    %c0_i32_1 = arith.constant 0 : i32
    return %arg0, %c0_i32, %c0_i32_0 : i32, i32, i32
  }
}

</mosaic_0001>

<bundles_post_ra>
// kernel: tpu_custom_call.1
= control target key start
LH: loop header
LB: loop body
LE: loop exit
PB: predicated region body
PF: predicated region fallthrough
CT: control target
= control target key end

     0   :  { %s3223_s0 = inlined_call_operand.vmem [shape: f32[2,8,128], index: 0, kind: input, shape index: {}]   ;;  %s3224_s1 = inlined_call_operand.vmem [shape: f32[2,8,128], index: 1, kind: input, shape index: {}]   ;;  %s3225_s2 = inlined_call_operand.vmem [shape: f32[16,16], index: 2, kind: input, shape index: {}]   ;;  %s3226_s3 = inlined_call_operand.vmem [shape: f32[16,16], index: 3, kind: input, shape index: {}]   ;;  %s3227_s4 = inlined_call_operand.vmem [shape: bf16[2,128,96], index: 4, kind: input, shape index: {}]   ;;  %s3228_s5 = inlined_call_operand.vmem [shape: f32[2,1,96], index: 5, kind: input, shape index: {}]   ;;  %s3229_s6 = inlined_call_operand.vmem [shape: bf16[2,32,128], index: 6, kind: input, shape index: {}]   ;;  %s3230_s7 = inlined_call_operand.vmem [shape: f32[2,1,128], index: 7, kind: input, shape index: {}]   ;;  %s3231_s8 = inlined_call_operand.vmem [shape: bf16[2,128,32], index: 8, kind: input, shape index: {}]   ;;  %s3232_s9 = inlined_call_operand.vmem [shape: f32[2,1,32], index: 9, kind: input, shape index: {}]   ;;  %s3233_s10 = inlined_call_operand.vmem [shape: bf16[2,128,64], index: 10, kind: input, shape index: {}]   ;;  %s3234_s11 = inlined_call_operand.vmem [shape: f32[2,1,64], index: 11, kind: input, shape index: {}]   ;;  %s3235_s12 = inlined_call_operand.vmem [shape: bf16[2,32,128], index: 12, kind: input, shape index: {}]   ;;  %s3236_s13 = inlined_call_operand.vmem [shape: f32[2,1,128], index: 13, kind: input, shape index: {}]   ;;  %s3237_s14 = inlined_call_operand.vmem [shape: bf16[2,128,64], index: 14, kind: input, shape index: {}]   ;;  %s3238_s15 = inlined_call_operand.vmem [shape: f32[2,1,64], index: 15, kind: input, shape index: {}]   ;;  %s3239_s16 = inlined_call_operand.vmem [shape: bf16[2,64,128], index: 16, kind: input, shape index: {}]   ;;  %s3240_s17 = inlined_call_operand.vmem [shape: f32[2,1,128], index: 17, kind: input, shape index: {}]   ;;  %s3241_s18 = inlined_call_operand.vmem [shape: f32[2,3,128], index: 18, kind: input, shape index: {}]   ;;  %s3242_s19 = inlined_call_operand.vmem [shape: f32[2,3,128], index: 19, kind: input, shape index: {}]   ;;  %s3243_s20 = inlined_call_operand.hbm [shape: f32[2,8,128], index: 20, kind: output, shape index: {}]  }
   0x1   :  { %3253 = sst [smem:[#allocation5_spill]] %s3223_s0 }
   0x2   :  { %3254 = sst [smem:[#allocation6_spill]] %s3224_s1 }
   0x3   :  { %3255 = sst [smem:[#allocation7_spill]] %s3225_s2 }
   0x4   :  { %3256 = sst [smem:[#allocation8_spill]] %s3226_s3 }
   0x5   :  { %3257 = sst [smem:[#allocation9_spill]] %s3227_s4 }
   0x6   :  { %25 = vsyncpa [#allocation3], 0  ;;  %s3258_s23 = sld [smem:[#allocation5_spill]]  ;;  %s3259_s26 = sld [smem:[#allocation6_spill]] }
   0x7   :  { %s3260_s30 = sld [smem:[#allocation7_spill]]  ;;  %s2793_s25 = smov 0  }
   0xc   :  { %v67_v0 = vld [vmem:[%s3258_s23] sm:$0xff]   ;;  %v68_v1 = vld [vmem:[%s3258_s23 + $0x8] sm:$0xff]   ;;  %s3261_s23 = sld [smem:[#allocation8_spill]] }
   0xd   :  { %v2760_v2 = vld [vmem:[%s3259_s26] sm:$0xff]  ;;  %v2765_v3 = vld [vmem:[%s3259_s26 + $0x8] sm:$0xff] }
   0xe   :  { %v2770_v4 = vld [vmem:[%s3260_s30] sm:$0xff]  ;;  %v71_v5 = vpack.c.bf16 %v2765_v3, %v2760_v2  ;;  %v2777_v6 = vld [vmem:[%s3260_s30 + $0x8] sm:$0xff] }
  0x12   :  { %v2782_v7 = vld [vmem:[%s3261_s23] sm:$0xff]  ;;  %v2787_v8 = vld [vmem:[%s3261_s23 + $0x8] sm:$0xff] }
  0x13 LB: > { %v2627_v9 = vmov 0.0   ;;  %vm2628_vm0 = vmmov 0   ;;  %s2808_s3 = sshll.u32 %s2625_s25, 6  ;;  %s3262_s28 = sld [smem:[#allocation9_spill]]  ;;  %v89_v18 = vpack.c.bf16 %v2617_v1, %v2621_v0  ;;  %vm218_vm1 = vcmask 64512   ;;  %s2625_s25 = sphi %s2793_s25, %s81_s25   ;;  %v2621_v0 = vphi %v67_v0, %v3269_v0   ;;  %v2617_v1 = vphi %v68_v1, %v3268_v1  }
  0x14   : > { %2186 = vmatprep.subr.bf16.mxu0 %v2627_v9  ;;  %2202 = vmatprep.mubr.msk.bf16.mxu0 %vm2628_vm0, %v2627_v9  ;;  %s109_s0 = scalar_lea.vmem %s3228_s5, %s2625_s25  ;;  %s2629_s21 = smov 96   ;;  %vm270_vm2 = vcmask 130048   ;;  %vm744_vm3 = vcmask 195584   ;;  %vm766_vm4 = vcmask 261120   ;;  %vm1885_vm5 = vcmask 523264  }
  0x15   : > { %2206 = vmatprep.subr.bf16.mxu1 %v2627_v9  ;;  %2208 = vmatprep.mubr.msk.bf16.mxu1 %vm2628_vm0, %v2627_v9  ;;  %v2027_v19 = vld [vmem:[%s109_s0] ss:$0 sm:$0xff]  ;;  %s2630_s1 = smov 64   ;;  %s2631_s22 = smov 88  }
  0x16   : > { %s2632_s23 = smov 120   ;;  %s3252_s24 = smov 72  }
  0x17   : > { %s2634_s2 = smov 56   ;;  %s2635_s26 = smov 80  }
  0x18   : > { %s2636_s27 = smov 112   ;;  %s3251_s29 = smov 8  }
  0x19   : > { %s92_s4 = scalar_lea.vmem %s3262_s28, %s2808_s3  ;;  %s2637_s28 = smov 104  }
  0x1a   : > { %v2463_v10 = vld [vmem:[%s92_s4] sm:$0xff]   ;;  %v2464_v11 = vld [vmem:[%s92_s4 + $0x8] sm:$0xff]   ;;  %v2465_v12 = vld [vmem:[%s92_s4 + $0x10] sm:$0xff]   ;;  %s2640_s30 = smov 40   ;;  %s3250_s0 = sshll.u32 %s2625_s25, 4 }
  0x1b   : > { %2187 = vmatpush3.bf16.msra.mxu0 %v2463_v10  ;;  %v2466_v13 = vld [vmem:[%s92_s4 + $0x18] sm:$0xff]   ;;  %v2467_v14 = vld [vmem:[%s92_s4 + $0x20] sm:$0xff]   ;;  %v2468_v15 = vld [vmem:[%s92_s4 + $0x28] sm:$0xff]  }
  0x1c   : > { %2188 = vmatprep.subr.bf16.mxu0 %v2627_v9  ;;  %v2469_v16 = vld [vmem:[%s92_s4 + $0x30] sm:$0xff]   ;;  %v2470_v17 = vld [vmem:[%s92_s4 + $0x38] sm:$0xff]   ;;  %s2638_s4 = smov 48  }
  0x1f   : > { %2189 = vmatpush3.bf16.msra.mxu0 %v2464_v11 }
  0x20   : > { %2190 = vmatprep.subr.bf16.mxu0 %v2627_v9 }
  0x23   : > { %2191 = vmatpush3.bf16.msra.mxu0 %v2465_v12 }
  0x24   : > { %2192 = vmatprep.subr.bf16.mxu0 %v2627_v9 }
  0x27   : > { %2193 = vmatpush3.bf16.msra.mxu0 %v2466_v13 }
  0x28   : > { %2194 = vmatprep.subr.bf16.mxu0 %v2627_v9 }
  0x2b   : > { %2195 = vmatpush3.bf16.msra.mxu0 %v2467_v14 }
  0x2c   : > { %2196 = vmatprep.subr.bf16.mxu0 %v2627_v9 }
  0x2f   : > { %2197 = vmatpush3.bf16.msra.mxu0 %v2468_v15 }
  0x30   : > { %2198 = vmatprep.subr.bf16.mxu0 %v2627_v9 }
  0x33   : > { %2199 = vmatpush3.bf16.msra.mxu0 %v2469_v16 }
  0x34   : > { %2200 = vmatprep.subr.bf16.mxu0 %v2627_v9 }
  0x37   : > { %2201 = vmatpush3.bf16.msra.mxu0 %v2470_v17 }
  0x38   : > { %2242 = vmatprep.subr.bf16.mxu0 %v2627_v9 }
  0x3a   : > { %2203 = vmatmul.mubr.bf16.vlgmr.msra.gmra.mrb[0].mxu0 %v89_v18 }
  0x3b   : > { %2244 = vmatprep.mubr.msk.bf16.mxu0 %vm2628_vm0, %v2627_v9 }
 0x10d   : > { %v199_v20 = vpop.f32.mrb[0].mxu0 }
 0x10e   : > { %v2204_v21 = vpop.f32.mrb[1].mxu0  ;;  %v200_v23 = vadd.f32 %v2027_v19, %v199_v20 }
 0x10f   : > { %v202_v22 = vpop.f32.mrb[2].mxu0 }
 0x110   : > { %v203_v24 = vadd.f32 %v2027_v19, %v202_v22  ;;  %v2205_v25 = vpop.f32.mrb[3].mxu0 }
 0x112   : > { %v2833_v26 = vpack.c.bf16 %v203_v24, %v200_v23 }
 0x114   : > { %216 = vrot.lane.b32.xlu0 %v2833_v26, %s2629_s21 }
 0x186   : > { %v217_v27 = vpop.permute.xlu0 %216 }
 0x187   : > { %v223_v28 = vsel %vm218_vm1, %v217_v27, 0 }
 0x188   : > { %2207 = vmatpush3.bf16.xpose.msra.mxu1 %v223_v28 }
 0x189   : > { %2212 = vmatprep.subr.bf16.mxu1 %v2627_v9 }
 0x18f   : > { %2209 = vmatmul.mubr.msk.bf16.vlgmr.msra.gmra.mrb[0].mxu1 %vm218_vm1, %v2833_v26 }
 0x190   : > { %2214 = vmatprep.mubr.msk.bf16.mxu1 %vm2628_vm0, %v2627_v9 }
 0x262   : > { %v259_v29 = vpop.f32.mrb[0].mxu1 }
 0x263   : > { %v266_v30 = vmul.f32 0.35355338, %v259_v29  ;;  %v2210_v31 = vpop.f32.mrb[1].mxu1 }
 0x264   : > { %v262_v32 = vpop.f32.mrb[2].mxu1 }
 0x265   : > { %v268_v33 = vadd.f32 %v266_v30, %v2770_v4  ;;  %v267_v34 = vmul.f32 0.35355338, %v262_v32  ;;  %v2211_v35 = vpop.f32.mrb[3].mxu1 }
 0x267   : > { %v269_v36 = vadd.f32 %v267_v34, %v2777_v6  ;;  %v271_v37 = vsel %vm270_vm2, %v268_v33, -inf }
 0x268   : > { %272 = vmax.xlane.f32.xlu0 %v271_v37 }
 0x269   : > { %v274_v38 = vsel %vm270_vm2, %v269_v36, -inf }
 0x26a   : > { %275 = vmax.xlane.f32.xlu1 %v274_v38 }
 0x27b   : > { %294 = vrot.lane.b32.xlu1 %v2833_v26, %s2630_s1  ;;  %s3248_s1 = smov 24  }
 0x2f5   : > { %v273_v39 = vpop.xlane.xlu0 %272 }
 0x2f6   : > { %v277_v40 = vsub.f32 %v268_v33, %v273_v39 }
 0x2f7   : > { %v276_v41 = vpop.xlane.xlu1 %275 }
 0x2f8   : > { %v279_v42 = vmul.f32 1.442695, %v277_v40  ;;  %v278_v43 = vsub.f32 %v269_v36, %v276_v41 }
 0x2fa   : > { %2503 = vpow2.f32 %v279_v42  ;;  %v281_v44 = vmul.f32 1.442695, %v278_v43 }
 0x2fb   : > { %v295_v45 = vpop.permute.xlu1 %294 }
 0x2fc   : > { %2505 = vpow2.f32 %v281_v44  ;;  %2213 = vmatpush3.bf16.msra.mxu1 %v295_v45 }
 0x2fd   : > { %2218 = vmatprep.subr.bf16.mxu1 %v2627_v9 }
 0x304   : > { %v2504_v46 = vpop.eup %2503 }
 0x305   : > { %v283_v47 = vsel %vm270_vm2, %v2504_v46, 0.0 }
 0x306   : > { %v2506_v48 = vpop.eup %2505  ;;  %284 = vadd.xlane.f32.xlu1 %v283_v47 }
 0x307   : > { %v286_v49 = vsel %vm270_vm2, %v2506_v48, 0.0 }
 0x30a   : > { %287 = vadd.xlane.f32.xlu1 %v286_v49 }
 0x31b   : > { %343 = vrot.lane.b32.xlu1 %v2833_v26, %s2631_s22 }
 0x31f   : > { %341 = vrot.lane.b32.xlu1 %v2833_v26, %s2632_s23 }
 0x393   : > { %v285_v50 = vpop.xlane.xlu1 %284 }
 0x394   : > { %2507 = vrcp.f32 %v285_v50 }
 0x397   : > { %v288_v51 = vpop.xlane.xlu1 %287 }
 0x398   : > { %2509 = vrcp.f32 %v288_v51 }
 0x39b   : > { %v344_v56 = vpop.permute.xlu1 %343 }
 0x39c   : > { %v349_v58 = vsel %vm218_vm1, %v344_v56, 0 }
 0x39e   : > { %v2508_v52 = vpop.eup %2507 }
 0x39f   : > { %v291_v54 = vmul.f32 %v2508_v52, %v2504_v46  ;;  %v342_v59 = vpop.permute.xlu1 %341 }
 0x3a2   : > { %v2510_v53 = vpop.eup %2509 }
 0x3a3   : > { %v292_v55 = vmul.f32 %v2510_v53, %v2506_v48 }
 0x3a5   : > { %v293_v57 = vpack.c.bf16 %v292_v55, %v291_v54 }
 0x3a7   : > { %2215 = vmatmul.mubr.msk.bf16.vlgmr.msra.gmra.mrb[4].mxu1 %vm270_vm2, %v293_v57 }
 0x3a8   : > { %2219 = vmatpush3.bf16.xpose.msra.mxu1 %v349_v58  ;;  %2220 = vmatprep.mubr.msk.bf16.mxu1 %vm2628_vm0, %v2627_v9 }
 0x3a9   : > { %2224 = vmatprep.subr.bf16.mxu1 %v2627_v9 }
 0x3af   : > { %2221 = vmatmul.mubr.msk.bf16.vlgmr.msra.gmra.mrb[8].mxu1 %vm218_vm1, %v342_v59 }
 0x3b0   : > { %2226 = vmatprep.mubr.msk.bf16.mxu1 %vm2628_vm0, %v2627_v9 }
 0x47a   : > { %v2863_v60 = vpop.f32.mrb[4].mxu1 }
 0x47b   : > { %v2216_v61 = vpop.f32.mrb[5].mxu1 }
 0x47c   : > { %v2865_v62 = vpop.f32.mrb[6].mxu1 }
 0x47d   : > { %v2217_v63 = vpop.f32.mrb[7].mxu1 }
 0x482   : > { %v385_v10 = vpop.f32.mrb[8].mxu1 }
 0x483   : > { %v392_v11 = vmul.f32 0.35355338, %v385_v10  ;;  %v2222_v12 = vpop.f32.mrb[9].mxu1 }
 0x484   : > { %v388_v13 = vpop.f32.mrb[10].mxu1 }
 0x485   : > { %v394_v14 = vadd.f32 %v392_v11, %v2770_v4  ;;  %v393_v15 = vmul.f32 0.35355338, %v388_v13  ;;  %v2223_v16 = vpop.f32.mrb[11].mxu1 }
 0x487   : > { %v395_v17 = vadd.f32 %v393_v15, %v2777_v6  ;;  %v396_v18 = vsel %vm270_vm2, %v394_v14, -inf }
 0x488   : > { %397 = vmax.xlane.f32.xlu0 %v396_v18 }
 0x489   : > { %v399_v19 = vsel %vm270_vm2, %v395_v17, -inf }
 0x48a   : > { %400 = vmax.xlane.f32.xlu1 %v399_v19 }
 0x49b   : > { %593 = vrot.lane.b32.xlu1 %v2833_v26, %s3252_s24 }
 0x49e   : > { %419 = vrot.lane.b32.xlu0 %v2833_v26, %s2634_s2  ;;  %s212_s2 = scalar_lea.vmem %s3230_s7, %s2625_s25 }
 0x515   : > { %v398_v20 = vpop.xlane.xlu0 %397 }
 0x516   : > { %v402_v21 = vsub.f32 %v394_v14, %v398_v20 }
 0x517   : > { %v401_v22 = vpop.xlane.xlu1 %400 }
 0x518   : > { %v404_v23 = vmul.f32 1.442695, %v402_v21  ;;  %v403_v24 = vsub.f32 %v395_v17, %v401_v22 }
 0x519   : > { %v420_v25 = vpop.permute.xlu0 %419 }
 0x51a   : > { %2511 = vpow2.f32 %v404_v23  ;;  %v406_v27 = vmul.f32 1.442695, %v403_v24  ;;  %2225 = vmatpush3.bf16.msra.mxu1 %v420_v25 }
 0x51b   : > { %v594_v28 = vpop.permute.xlu1 %593  ;;  %2230 = vmatprep.subr.bf16.mxu1 %v2627_v9 }
 0x51c   : > { %2513 = vpow2.f32 %v406_v27  ;;  %v599_v29 = vsel %vm218_vm1, %v594_v28, 0 }
 0x51d   : > { %2243 = vmatpush3.bf16.xpose.msra.mxu0 %v599_v29 }
 0x51e   : > { %2254 = vmatprep.subr.bf16.mxu0 %v2627_v9 }
 0x524   : > { %v2512_v30 = vpop.eup %2511 }
 0x525   : > { %v408_v31 = vsel %vm270_vm2, %v2512_v30, 0.0 }
 0x526   : > { %v2514_v32 = vpop.eup %2513  ;;  %409 = vadd.xlane.f32.xlu0 %v408_v31 }
 0x527   : > { %v411_v33 = vsel %vm270_vm2, %v2514_v32, 0.0 }
 0x52a   : > { %412 = vadd.xlane.f32.xlu0 %v411_v33 }
 0x540   : > { %468 = vrot.lane.b32.xlu0 %v2833_v26, %s2635_s26 }
 0x544   : > { %466 = vrot.lane.b32.xlu0 %v2833_v26, %s2636_s27 }
 0x548   : > { %591 = vrot.lane.b32.xlu0 %v2833_v26, %s2637_s28 }
 0x5b3   : > { %v410_v34 = vpop.xlane.xlu0 %409 }
 0x5b4   : > { %2515 = vrcp.f32 %v410_v34 }
 0x5b7   : > { %v413_v35 = vpop.xlane.xlu0 %412 }
 0x5b8   : > { %2517 = vrcp.f32 %v413_v35 }
 0x5bb   : > { %v469_v36 = vpop.permute.xlu0 %468 }
 0x5bc   : > { %v474_v44 = vsel %vm218_vm1, %v469_v36, 0 }
 0x5be   : > { %v2516_v38 = vpop.eup %2515 }
 0x5bf   : > { %v467_v37 = vpop.permute.xlu0 %466  ;;  %v416_v40 = vmul.f32 %v2516_v38, %v2512_v30 }
 0x5c2   : > { %v2518_v39 = vpop.eup %2517 }
 0x5c3   : > { %v417_v41 = vmul.f32 %v2518_v39, %v2514_v32  ;;  %v592_v42 = vpop.permute.xlu0 %591 }
 0x5c4   : > { %2245 = vmatmul.mubr.msk.bf16.vlgmr.msra.gmra.mrb[4].mxu0 %vm218_vm1, %v592_v42 }
 0x5c5   : > { %v418_v43 = vpack.c.bf16 %v417_v41, %v416_v40  ;;  %2258 = vmatprep.mubr.msk.bf16.mxu0 %vm2628_vm0, %v2627_v9 }
 0x5c7   : > { %2227 = vmatmul.mubr.msk.bf16.vlgmr.msra.gmra.mrb[12].mxu1 %vm270_vm2, %v418_v43 }
 0x5c8   : > { %2231 = vmatpush3.bf16.xpose.msra.mxu1 %v474_v44  ;;  %2232 = vmatprep.mubr.msk.bf16.mxu1 %vm2628_vm0, %v2627_v9 }
 0x5c9   : > { %2236 = vmatprep.subr.bf16.mxu1 %v2627_v9 }
 0x5cf   : > { %2233 = vmatmul.mubr.msk.bf16.vlgmr.msra.gmra.mrb[16].mxu1 %vm218_vm1, %v467_v37 }
 0x5d0   : > { %2238 = vmatprep.mubr.msk.bf16.mxu1 %vm2628_vm0, %v2627_v9 }
 0x697   : > { %v635_v45 = vpop.f32.mrb[4].mxu0 }
 0x698   : > { %v2246_v46 = vpop.f32.mrb[5].mxu0  ;;  %v642_v55 = vmul.f32 0.35355338, %v635_v45 }
 0x699   : > { %v638_v47 = vpop.f32.mrb[6].mxu0 }
 0x69a   : > { %v459_v48 = vpop.f32.mrb[12].mxu1  ;;  %v2247_v49 = vpop.f32.mrb[7].mxu0  ;;  %v644_v10 = vadd.f32 %v642_v55, %v2770_v4  ;;  %v643_v11 = vmul.f32 0.35355338, %v638_v47 }
 0x69b   : > { %v2228_v50 = vpop.f32.mrb[13].mxu1 }
 0x69c   : > { %v462_v51 = vpop.f32.mrb[14].mxu1  ;;  %v645_v15 = vadd.f32 %v643_v11, %v2777_v6  ;;  %v646_v16 = vsel %vm270_vm2, %v644_v10, -inf }
 0x69d   : > { %v2433_v52 = vpack.i.bf16 %v462_v51, %v459_v48  ;;  %v2229_v53 = vpop.f32.mrb[15].mxu1 }
 0x69e   : > { %v649_v17 = vsel %vm270_vm2, %v645_v15, -inf }
 0x6a2   : > { %v510_v54 = vpop.f32.mrb[16].mxu1 }
 0x6a3   : > { %v517_v56 = vmul.f32 0.35355338, %v510_v54  ;;  %v2234_v57 = vpop.f32.mrb[17].mxu1 }
 0x6a4   : > { %v513_v58 = vpop.f32.mrb[18].mxu1 }
 0x6a5   : > { %v519_v59 = vadd.f32 %v517_v56, %v2770_v4  ;;  %v518_v61 = vmul.f32 0.35355338, %v513_v58  ;;  %v2235_v63 = vpop.f32.mrb[19].mxu1 }
 0x6a7   : > { %v520_v12 = vadd.f32 %v518_v61, %v2777_v6  ;;  %v521_v13 = vsel %vm270_vm2, %v519_v59, -inf }
 0x6a8   : > { %522 = vmax.xlane.f32.xlu0 %v521_v13 }
 0x6a9   : > { %v524_v14 = vsel %vm270_vm2, %v520_v12, -inf }
 0x6aa   : > { %525 = vmax.xlane.f32.xlu1 %v524_v14 }
 0x6ac   : > { %647 = vmax.xlane.f32.xlu0 %v646_v16 }
 0x6b0   : > { %650 = vmax.xlane.f32.xlu0 %v649_v17 }
 0x735   : > { %v523_v18 = vpop.xlane.xlu0 %522 }
 0x736   : > { %v527_v19 = vsub.f32 %v519_v59, %v523_v18 }
 0x737   : > { %v526_v20 = vpop.xlane.xlu1 %525 }
 0x738   : > { %v529_v21 = vmul.f32 1.442695, %v527_v19  ;;  %v528_v22 = vsub.f32 %v520_v12, %v526_v20 }
 0x739   : > { %v648_v23 = vpop.xlane.xlu0 %647 }
 0x73a   : > { %2519 = vpow2.f32 %v529_v21  ;;  %v531_v24 = vmul.f32 1.442695, %v528_v22  ;;  %v652_v25 = vsub.f32 %v644_v10, %v648_v23 }
 0x73c   : > { %2521 = vpow2.f32 %v531_v24  ;;  %v654_v27 = vmul.f32 1.442695, %v652_v25 }
 0x73d   : > { %v651_v28 = vpop.xlane.xlu0 %650 }
 0x73e   : > { %2523 = vpow2.f32 %v654_v27  ;;  %v653_v29 = vsub.f32 %v645_v15, %v651_v28 }
 0x740   : > { %v656_v30 = vmul.f32 1.442695, %v653_v29 }
 0x742   : > { %2525 = vpow2.f32 %v656_v30 }
 0x744   : > { %v2520_v31 = vpop.eup %2519 }
 0x745   : > { %v533_v32 = vsel %vm270_vm2, %v2520_v31, 0.0 }
 0x746   : > { %v2522_v33 = vpop.eup %2521  ;;  %534 = vadd.xlane.f32.xlu0 %v533_v32  ;;  %v2045_v32 = vld [vmem:[%s212_s2] ss:$0 sm:$0xff]  ;;  %s1088_s2 = scalar_lea.vmem %s3236_s13, %s2625_s25 }
 0x747   : > { %v536_v36 = vsel %vm270_vm2, %v2522_v33, 0.0 }
 0x748   : > { %v2524_v34 = vpop.eup %2523 }
 0x749   : > { %v658_v35 = vsel %vm270_vm2, %v2524_v34, 0.0 }
 0x74a   : > { %659 = vadd.xlane.f32.xlu1 %v658_v35  ;;  %537 = vadd.xlane.f32.xlu0 %v536_v36 }
 0x74c   : > { %v2526_v37 = vpop.eup %2525 }
 0x74d   : > { %v661_v38 = vsel %vm270_vm2, %v2526_v37, 0.0 }
 0x74e   : > { %662 = vadd.xlane.f32.xlu0 %v661_v38 }
 0x75b   : > { %544 = vrot.lane.b32.xlu1 %v2833_v26, %s2638_s4  ;;  %s207_s4 = scalar_lea.vmem %s3229_s6, %s3250_s0 }
 0x75c   : > { %v2471_v54 = vld [vmem:[%s207_s4] sm:$0xff]   ;;  %v2472_v57 = vld [vmem:[%s207_s4 + $0x8] sm:$0xff]   ;;  %s2972_s4 = scalar_lea.vmem %s3231_s8, %s2808_s3 }
 0x75d   : > { %2255 = vmatpush3.bf16.msra.mxu0 %v2471_v54 }
 0x75e   : > { %2256 = vmatprep.subr.bf16.mxu0 %v2627_v9 }
 0x75f   : > { %2434 = vrot.lane.b32.xlu1 %v2433_v52, %s3251_s29 }
 0x761   : > { %2257 = vmatpush3.bf16.msra.mxu0 %v2472_v57 }
 0x762   : > { %2282 = vmatprep.subr.bf16.mxu0 %v2627_v9 }
 0x764   : > { %669 = vrot.lane.b32.xlu0 %v2833_v26, %s2640_s30  ;;  %s3249_s30 = smov 16  }
 0x7d3   : > { %v535_v39 = vpop.xlane.xlu0 %534 }
 0x7d4   : > { %2527 = vrcp.f32 %v535_v39 }
 0x7d7   : > { %v660_v40 = vpop.xlane.xlu1 %659  ;;  %v538_v41 = vpop.xlane.xlu0 %537 }
 0x7d8   : > { %2529 = vrcp.f32 %v538_v41 }
 0x7db   : > { %v545_v42 = vpop.permute.xlu1 %544  ;;  %v663_v43 = vpop.xlane.xlu0 %662 }
 0x7dc   : > { %2237 = vmatpush3.bf16.msra.mxu1 %v545_v42  ;;  %2531 = vrcp.f32 %v663_v43  ;;  %v2478_v43 = vld [vmem:[%s2972_s4 + $0x8] sm:$0xff]  }
 0x7dd   : > { %2248 = vmatprep.subr.bf16.mxu1 %v2627_v9  ;;  %2533 = vrcp.f32 %v660_v40 }
 0x7de   : > { %v2528_v44 = vpop.eup %2527 }
 0x7df   : > { %v541_v46 = vmul.f32 %v2528_v44, %v2520_v31  ;;  %v670_v49 = vpop.permute.xlu0 %669  ;;  %v2435_v14 = vpop.permute.xlu1 %2434 }
 0x7e0   : > { %v2437_v16 = vunpack.i.h.bf16 %v2435_v14  ;;  %v2436_v17 = vunpack.i.l.bf16 %v2435_v14 }
 0x7e2   : > { %v2530_v45 = vpop.eup %2529  ;;  %v741_v21 = vsel %vm218_vm1, %v2865_v62, %v2437_v16  ;;  %v740_v22 = vsel %vm218_vm1, %v2863_v60, %v2436_v17 }
 0x7e3   : > { %v542_v47 = vmul.f32 %v2530_v45, %v2522_v33  ;;  %v2480_v45 = vld [vmem:[%s2972_s4 + $0x10] sm:$0xff]  }
 0x7e5   : > { %v543_v48 = vpack.c.bf16 %v542_v47, %v541_v46  ;;  %v2482_v47 = vld [vmem:[%s2972_s4 + $0x18] sm:$0xff]  }
 0x7e6   : > { %v2532_v26 = vpop.eup %2531 }
 0x7e7   : > { %2239 = vmatmul.mubr.msk.bf16.vlgmr.msra.gmra.mrb[20].mxu1 %vm270_vm2, %v543_v48  ;;  %v2534_v50 = vpop.eup %2533  ;;  %v667_v51 = vmul.f32 %v2532_v26, %v2526_v37  ;;  %v2484_v26 = vld [vmem:[%s2972_s4 + $0x20] sm:$0xff]  }
 0x7e8   : > { %2249 = vmatpush3.bf16.msra.mxu1 %v670_v49  ;;  %2250 = vmatprep.mubr.msk.bf16.mxu1 %vm2628_vm0, %v2627_v9  ;;  %v666_v52 = vmul.f32 %v2534_v50, %v2524_v34  ;;  %v2486_v50 = vld [vmem:[%s2972_s4 + $0x28] sm:$0xff]  }
 0x7e9   : > { %2262 = vmatprep.subr.bf16.mxu1 %v2627_v9 }
 0x7ea   : > { %v668_v53 = vpack.c.bf16 %v667_v51, %v666_v52  ;;  %v2487_v51 = vld [vmem:[%s2972_s4 + $0x30] sm:$0xff]   ;;  %v2488_v52 = vld [vmem:[%s2972_s4 + $0x38] sm:$0xff]  }
 0x7ef   : > { %2251 = vmatmul.mubr.msk.bf16.vlgmr.msra.gmra.mrb[24].mxu1 %vm270_vm2, %v668_v53 }
 0x7f0   : > { %2278 = vmatprep.mubr.msk.bf16.mxu1 %vm2628_vm0, %v2627_v9 }
 0x8ba   : > { %v584_v55 = vpop.f32.mrb[20].mxu1 }
 0x8bb   : > { %v2240_v56 = vpop.f32.mrb[21].mxu1 }
 0x8bc   : > { %v587_v58 = vpop.f32.mrb[22].mxu1 }
 0x8bd   : > { %v2438_v59 = vpack.i.bf16 %v587_v58, %v584_v55  ;;  %v2241_v61 = vpop.f32.mrb[23].mxu1 }
 0x8bf   : > { %2439 = vrot.lane.b32.xlu1 %v2438_v59, %s3249_s30 }
 0x8c2   : > { %v709_v63 = vpop.f32.mrb[24].mxu1 }
 0x8c3   : > { %v2252_v10 = vpop.f32.mrb[25].mxu1 }
 0x8c4   : > { %v712_v11 = vpop.f32.mrb[26].mxu1 }
 0x8c5   : > { %v2443_v12 = vpack.i.bf16 %v712_v11, %v709_v63  ;;  %v2253_v13 = vpop.f32.mrb[27].mxu1 }
 0x8c7   : > { %2444 = vrot.lane.b32.xlu0 %v2443_v12, %s3248_s1  ;;  %s2944_s1 = scalar_lea.vmem %s3233_s10, %s2808_s3  ;;  %v839_v12 = vlaneseq }
 0x8c8   : > { %v2473_v60 = vld [vmem:[%s2944_s1] sm:$0xff]   ;;  %v2474_v62 = vld [vmem:[%s2944_s1 + $0x8] sm:$0xff]   ;;  %v2475_v31 = vld [vmem:[%s2944_s1 + $0x10] sm:$0xff]  }
 0x8c9   : > { %v2479_v44 = vld [vmem:[%s2944_s1 + $0x20] sm:$0xff]   ;;  %v2481_v46 = vld [vmem:[%s2944_s1 + $0x28] sm:$0xff]   ;;  %v2483_v48 = vld [vmem:[%s2944_s1 + $0x30] sm:$0xff]   ;;  %v3006_v16 = vshrl.u32 %v839_v12, 7 }
 0x8ca   : > { %v2485_v49 = vld [vmem:[%s2944_s1 + $0x38] sm:$0xff]  }
 0x8cb   : > { %v841_v17 = vsub.s32 0, %v3006_v16 }
 0x931   : > { %v2440_v15 = vpop.permute.xlu1 %2439 }
 0x932   : > { %v2442_v18 = vunpack.i.h.bf16 %v2440_v15  ;;  %v2441_v19 = vunpack.i.l.bf16 %v2440_v15 }
 0x934   : > { %v743_v25 = vsel %vm270_vm2, %v741_v21, %v2442_v18  ;;  %v742_v27 = vsel %vm270_vm2, %v740_v22, %v2441_v19 }
 0x939   : > { %v2445_v20 = vpop.permute.xlu0 %2444 }
 0x93a   : > { %v2447_v23 = vunpack.i.h.bf16 %v2445_v20  ;;  %v2446_v24 = vunpack.i.l.bf16 %v2445_v20 }
 0x93c   : > { %v746_v28 = vsel %vm744_vm3, %v743_v25, %v2447_v23  ;;  %v745_v29 = vsel %vm744_vm3, %v742_v27, %v2446_v24 }
 0x93d   : > { %v747_v30 = vpack.c.bf16 %v746_v28, %v745_v29 }
 0x93f   : > { %2259 = vmatmul.mubr.msk.bf16.vlgmr.msra.gmra.mrb[8].mxu0 %vm766_vm4, %v747_v30 }
 0x940   : > { %2298 = vmatprep.mubr.msk.bf16.mxu0 %vm2628_vm0, %v2627_v9  ;;  %2283 = vmatpush3.bf16.msra.mxu0 %v2473_v60 }
 0x941   : > { %2284 = vmatprep.subr.bf16.mxu0 %v2627_v9 }
 0x944   : > { %2285 = vmatpush3.bf16.msra.mxu0 %v2474_v62 }
 0x945   : > { %2286 = vmatprep.subr.bf16.mxu0 %v2627_v9 }
 0x948   : > { %2287 = vmatpush3.bf16.msra.mxu0 %v2475_v31 }
 0x949   : > { %2288 = vmatprep.subr.bf16.mxu0 %v2627_v9 }
 0xa12   : > { %v804_v33 = vpop.f32.mrb[8].mxu0 }
 0xa13   : > { %v805_v34 = vadd.f32 %v2045_v32, %v804_v33  ;;  %v2260_v35 = vpop.f32.mrb[9].mxu0 }
 0xa14   : > { %v807_v36 = vpop.f32.mrb[10].mxu0 }
 0xa15   : > { %v2957_v37 = vadd.f32 %v2621_v0, %v805_v34  ;;  %v808_v38 = vadd.f32 %v2045_v32, %v807_v36  ;;  %v2261_v39 = vpop.f32.mrb[11].mxu0  ;;  %v2476_v0 = vld [vmem:[%s2972_s4] sm:$0xff]   ;;  %s3266_s4 = smov 16  }
 0xa16   : > { %2263 = vmatpush3.bf16.msra.mxu1 %v2476_v0 }
 0xa17   : > { %v2960_v40 = vadd.f32 %v2617_v1, %v808_v38  ;;  %813 = vadd.xlane.f32.xlu1 %v2957_v37  ;;  %v819_v42 = vmul.f32 %v2957_v37, %v2957_v37  ;;  %v2477_v1 = vld [vmem:[%s2944_s1 + $0x18] sm:$0xff]   ;;  %2264 = vmatprep.subr.bf16.mxu1 %v2627_v9  ;;  %s2024_s1 = sshll.u32 %s2625_s25, 2 }
 0xa18   : > { %2289 = vmatpush3.bf16.msra.mxu0 %v2477_v1  ;;  %s85_s30 = scalar_lea.vmem %s3241_s18, %s2024_s1  ;;  %s87_s24 = scalar_lea.vmem %s3242_s19, %s2024_s1 }
 0xa19   : > { %815 = vadd.xlane.f32.xlu0 %v2960_v40  ;;  %v820_v41 = vmul.f32 %v2960_v40, %v2960_v40  ;;  %2290 = vmatprep.subr.bf16.mxu0 %v2627_v9  ;;  %v3012_v18 = vld [vmem:[%s85_s30] sm:$0x7]  ;;  %s985_s1 = scalar_lea.vmem %s3234_s11, %s2625_s25  ;;  %s870_s30 = scalar_lea.vmem %s3232_s9, %s2625_s25 }
 0xa1a   : > { %2265 = vmatpush3.bf16.msra.mxu1 %v2478_v43  ;;  %v842_v20 = vrot.slane %v3012_v18, %v841_v17  ;;  %v3019_v22 = vld [vmem:[%s87_s24] sm:$0x7]  ;;  %s3267_s24 = smov 24  }
 0xa1b   : > { %823 = vadd.xlane.f32.xlu1 %v820_v41  ;;  %2266 = vmatprep.subr.bf16.mxu1 %v2627_v9  ;;  %v848_v29 = vrot.slane %v3019_v22, %v841_v17  ;;  %v2060_v32 = vld [vmem:[%s985_s1] ss:$0 sm:$0xff]  ;;  %s1853_s1 = scalar_lea.vmem %s3240_s17, %s2625_s25 }
 0xa1c   : > { %2291 = vmatpush3.bf16.msra.mxu0 %v2479_v44  ;;  %v2050_v41 = vld [vmem:[%s870_s30] ss:$0 sm:$0xff] }
 0xa1d   : > { %821 = vadd.xlane.f32.xlu0 %v819_v42  ;;  %2292 = vmatprep.subr.bf16.mxu0 %v2627_v9 }
 0xa1e   : > { %2267 = vmatpush3.bf16.msra.mxu1 %v2480_v45 }
 0xa1f   : > { %2268 = vmatprep.subr.bf16.mxu1 %v2627_v9 }
 0xa20   : > { %2293 = vmatpush3.bf16.msra.mxu0 %v2481_v46 }
 0xa21   : > { %2294 = vmatprep.subr.bf16.mxu0 %v2627_v9 }
 0xa22   : > { %2269 = vmatpush3.bf16.msra.mxu1 %v2482_v47 }
 0xa23   : > { %2270 = vmatprep.subr.bf16.mxu1 %v2627_v9 }
 0xa24   : > { %2295 = vmatpush3.bf16.msra.mxu0 %v2483_v48 }
 0xa25   : > { %2296 = vmatprep.subr.bf16.mxu0 %v2627_v9 }
 0xa26   : > { %2271 = vmatpush3.bf16.msra.mxu1 %v2484_v26 }
 0xa27   : > { %2272 = vmatprep.subr.bf16.mxu1 %v2627_v9 }
 0xa28   : > { %2297 = vmatpush3.bf16.msra.mxu0 %v2485_v49 }
 0xa29   : > { %2308 = vmatprep.subr.bf16.mxu0 %v2627_v9 }
 0xa2a   : > { %2273 = vmatpush3.bf16.msra.mxu1 %v2486_v50 }
 0xa2b   : > { %2299 = vmatmul.mubr.bf16.vlgmr.msra.gmra.mrb[12].mxu0 %v71_v5  ;;  %2274 = vmatprep.subr.bf16.mxu1 %v2627_v9 }
 0xa2c   : > { %2310 = vmatprep.mubr.msk.bf16.mxu0 %vm2628_vm0, %v2627_v9 }
 0xa2e   : > { %2275 = vmatpush3.bf16.msra.mxu1 %v2487_v51 }
 0xa2f   : > { %2276 = vmatprep.subr.bf16.mxu1 %v2627_v9 }
 0xa32   : > { %2277 = vmatpush3.bf16.msra.mxu1 %v2488_v52 }
 0xa33   : > { %2302 = vmatprep.subr.bf16.mxu1 %v2627_v9 }
 0xaa4   : > { %v814_v53 = vpop.xlane.xlu1 %813 }
 0xaa5   : > { %v817_v55 = vmul.f32 0.03125, %v814_v53 }
 0xaa6   : > { %v816_v54 = vpop.xlane.xlu0 %815 }
 0xaa7   : > { %v818_v56 = vmul.f32 0.03125, %v816_v54  ;;  %v827_v63 = vmul.f32 %v817_v55, %v817_v55  ;;  %v831_v23 = vsub.f32 %v2957_v37, %v817_v55 }
 0xaa8   : > { %v824_v57 = vpop.xlane.xlu1 %823 }
 0xaa9   : > { %v828_v58 = vmul.f32 %v818_v56, %v818_v56  ;;  %v826_v59 = vmul.f32 0.03125, %v824_v57  ;;  %v832_v19 = vsub.f32 %v2960_v40, %v818_v56 }
 0xaaa   : > { %v822_v61 = vpop.xlane.xlu0 %821 }
 0xaab   : > { %v830_v10 = vsub.f32 %v826_v59, %v828_v58  ;;  %v825_v11 = vmul.f32 0.03125, %v822_v61 }
 0xaad   : > { %v834_v13 = vadd.f32 1e-05, %v830_v10  ;;  %v829_v14 = vsub.f32 %v825_v11, %v827_v63 }
 0xaaf   : > { %2535 = vrsqrt.f32 %v834_v13  ;;  %v833_v15 = vadd.f32 1e-05, %v829_v14 }
 0xab1   : > { %2537 = vrsqrt.f32 %v833_v15 }
 0xab9   : > { %v2536_v21 = vpop.eup %2535 }
 0xaba   : > { %v838_v24 = vmul.f32 %v2536_v21, %v832_v19 }
 0xabb   : > { %v2538_v25 = vpop.eup %2537 }
 0xabc   : > { %v837_v27 = vmul.f32 %v2538_v25, %v831_v23  ;;  %v844_v28 = vmul.f32 %v842_v20, %v838_v24 }
 0xabe   : > { %v843_v30 = vmul.f32 %v842_v20, %v837_v27  ;;  %v3025_v62 = vadd.f32 %v848_v29, %v844_v28 }
 0xac0   : > { %v3023_v60 = vadd.f32 %v848_v29, %v843_v30 }
 0xac2   : > { %v851_v31 = vpack.c.bf16 %v3025_v62, %v3023_v60 }
 0xac4   : > { %2279 = vmatmul.mubr.bf16.vlgmr.msra.gmra.mrb[28].mxu1 %v851_v31 }
 0xac5   : > { %2304 = vmatprep.mubr.msk.bf16.mxu1 %vm2628_vm0, %v2627_v9 }
 0xafe   : > { %v1075_v33 = vpop.f32.mrb[12].mxu0 }
 0xaff   : > { %v1076_v34 = vadd.f32 %v2060_v32, %v1075_v33  ;;  %v2300_v35 = vpop.f32.mrb[13].mxu0 }
 0xb00   : > { %v1078_v36 = vpop.f32.mrb[14].mxu0 }
 0xb01   : > { %v1079_v37 = vadd.f32 %v2060_v32, %v1078_v36  ;;  %v2301_v38 = vpop.f32.mrb[15].mxu0 }
 0xb03   : > { %v3035_v39 = vpack.c.bf16 %v1079_v37, %v1076_v34 }
 0xb05   : > { %1217 = vrot.lane.b32.xlu0 %v3035_v39, %s2632_s23  ;;  %v1096_v40 = vsel %vm218_vm1, %v3035_v39, 0 }
 0xb06   : > { %2303 = vmatpush3.bf16.xpose.msra.mxu1 %v1096_v40 }
 0xb07   : > { %2314 = vmatprep.subr.bf16.mxu1 %v2627_v9 }
 0xb77   : > { %v1218_v46 = vpop.permute.xlu0 %1217 }
 0xb78   : > { %v1223_v48 = vsel %vm218_vm1, %v1218_v46, 0 }
 0xb97   : > { %v960_v42 = vpop.f32.mrb[28].mxu1 }
 0xb98   : > { %v2280_v0 = vpop.f32.mrb[29].mxu1  ;;  %v961_v43 = vadd.f32 %v2050_v41, %v960_v42 }
 0xb99   : > { %v963_v1 = vpop.f32.mrb[30].mxu1 }
 0xb9a   : > { %v964_v44 = vadd.f32 %v2050_v41, %v963_v1  ;;  %v2281_v45 = vpop.f32.mrb[31].mxu1 }
 0xb9c   : > { %v1090_v47 = vpack.c.bf16 %v964_v44, %v961_v43 }
 0xb9e   : > { %1215 = vrot.lane.b32.xlu1 %v1090_v47, %s2632_s23  ;;  %1340 = vrot.lane.b32.xlu0 %v1090_v47, %s2636_s27  ;;  %s3265_s23 = sshll.u32 %s2625_s25, 4 }
 0xb9f   : > { %2305 = vmatmul.mubr.msk.bf16.vlgmr.msra.gmra.mrb[32].mxu1 %vm218_vm1, %v1090_v47 }
 0xba0   : > { %2315 = vmatpush3.bf16.xpose.msra.mxu1 %v1223_v48  ;;  %2316 = vmatprep.mubr.msk.bf16.mxu1 %vm2628_vm0, %v2627_v9 }
 0xba1   : > { %2326 = vmatprep.subr.bf16.mxu1 %v2627_v9 }
 0xba2   : > { %1342 = vrot.lane.b32.xlu1 %v3035_v39, %s2636_s27  ;;  %1465 = vrot.lane.b32.xlu0 %v1090_v47, %s2637_s28 }
 0xba6   : > { %1467 = vrot.lane.b32.xlu1 %v3035_v39, %s2637_s28  ;;  %s1083_s28 = scalar_lea.vmem %s3235_s12, %s3265_s23 }
 0xc10   : > { %v1216_v26 = vpop.permute.xlu1 %1215  ;;  %v1341_v52 = vpop.permute.xlu0 %1340 }
 0xc11   : > { %2317 = vmatmul.mubr.msk.bf16.vlgmr.msra.gmra.mrb[36].mxu1 %vm218_vm1, %v1216_v26 }
 0xc12   : > { %2328 = vmatprep.mubr.msk.bf16.mxu1 %vm2628_vm0, %v2627_v9 }
 0xc14   : > { %v1343_v49 = vpop.permute.xlu1 %1342  ;;  %v1466_v54 = vpop.permute.xlu0 %1465 }
 0xc15   : > { %v1348_v50 = vsel %vm218_vm1, %v1343_v49, 0 }
 0xc16   : > { %2327 = vmatpush3.bf16.xpose.msra.mxu1 %v1348_v50 }
 0xc17   : > { %2338 = vmatprep.subr.bf16.mxu1 %v2627_v9 }
 0xc18   : > { %v1468_v51 = vpop.permute.xlu1 %1467 }
 0xc19   : > { %v1473_v53 = vsel %vm218_vm1, %v1468_v51, 0 }
 0xc1d   : > { %2329 = vmatmul.mubr.msk.bf16.vlgmr.msra.gmra.mrb[40].mxu1 %vm218_vm1, %v1341_v52 }
 0xc1e   : > { %2339 = vmatpush3.bf16.xpose.msra.mxu1 %v1473_v53  ;;  %2340 = vmatprep.mubr.msk.bf16.mxu1 %vm2628_vm0, %v2627_v9 }
 0xc1f   : > { %2350 = vmatprep.subr.bf16.mxu1 %v2627_v9 }
 0xc25   : > { %2341 = vmatmul.mubr.msk.bf16.vlgmr.msra.gmra.mrb[44].mxu1 %vm218_vm1, %v1466_v54 }
 0xc26   : > { %2354 = vmatprep.mubr.msk.bf16.mxu1 %vm2628_vm0, %v2627_v9 }
 0xc72   : > { %v1132_v55 = vpop.f32.mrb[32].mxu1 }
 0xc73   : > { %v1139_v56 = vmul.f32 0.35355338, %v1132_v55  ;;  %v2306_v57 = vpop.f32.mrb[33].mxu1 }
 0xc74   : > { %v1135_v58 = vpop.f32.mrb[34].mxu1 }
 0xc75   : > { %v1141_v59 = vadd.f32 %v1139_v56, %v2782_v7  ;;  %v1140_v61 = vmul.f32 0.35355338, %v1135_v58  ;;  %v2307_v63 = vpop.f32.mrb[35].mxu1 }
 0xc77   : > { %v1142_v10 = vadd.f32 %v1140_v61, %v2787_v8  ;;  %v1143_v11 = vsel %vm270_vm2, %v1141_v59, -inf }
 0xc78   : > { %1144 = vmax.xlane.f32.xlu1 %v1143_v11 }
 0xc79   : > { %v1146_v12 = vsel %vm270_vm2, %v1142_v10, -inf }
 0xc7a   : > { %1147 = vmax.xlane.f32.xlu0 %v1146_v12 }
 0xce4   : > { %v1259_v13 = vpop.f32.mrb[36].mxu1 }
 0xce5   : > { %v1266_v14 = vmul.f32 0.35355338, %v1259_v13  ;;  %v2318_v15 = vpop.f32.mrb[37].mxu1 }
 0xce6   : > { %v1262_v17 = vpop.f32.mrb[38].mxu1 }
 0xce7   : > { %v1268_v19 = vadd.f32 %v1266_v14, %v2782_v7  ;;  %v1267_v20 = vmul.f32 0.35355338, %v1262_v17  ;;  %v2319_v21 = vpop.f32.mrb[39].mxu1 }
 0xce9   : > { %v1269_v23 = vadd.f32 %v1267_v20, %v2787_v8  ;;  %v1270_v24 = vsel %vm270_vm2, %v1268_v19, -inf }
 0xcea   : > { %1271 = vmax.xlane.f32.xlu0 %v1270_v24 }
 0xceb   : > { %v1273_v25 = vsel %vm270_vm2, %v1269_v23, -inf }
 0xcec   : > { %1274 = vmax.xlane.f32.xlu1 %v1273_v25 }
 0xcf0   : > { %v1384_v27 = vpop.f32.mrb[40].mxu1 }
 0xcf1   : > { %v1391_v28 = vmul.f32 0.35355338, %v1384_v27  ;;  %v2330_v29 = vpop.f32.mrb[41].mxu1 }
 0xcf2   : > { %v1387_v30 = vpop.f32.mrb[42].mxu1 }
 0xcf3   : > { %v3080_v31 = vadd.f32 %v1391_v28, %v2782_v7  ;;  %v1392_v32 = vmul.f32 0.35355338, %v1387_v30  ;;  %v2331_v33 = vpop.f32.mrb[43].mxu1 }
 0xcf5   : > { %v1394_v34 = vadd.f32 %v1392_v32, %v2787_v8  ;;  %v1395_v35 = vsel %vm270_vm2, %v3080_v31, -inf }
 0xcf6   : > { %1396 = vmax.xlane.f32.xlu0 %v1395_v35 }
 0xcf7   : > { %v1398_v36 = vsel %vm270_vm2, %v1394_v34, -inf }
 0xcf8   : > { %1399 = vmax.xlane.f32.xlu1 %v1398_v36  ;;  %v1509_v37 = vpop.f32.mrb[44].mxu1 }
 0xcf9   : > { %v1516_v38 = vmul.f32 0.35355338, %v1509_v37  ;;  %v2342_v40 = vpop.f32.mrb[45].mxu1 }
 0xcfa   : > { %v1512_v41 = vpop.f32.mrb[46].mxu1 }
 0xcfb   : > { %v1518_v42 = vadd.f32 %v1516_v38, %v2782_v7  ;;  %v1517_v0 = vmul.f32 0.35355338, %v1512_v41  ;;  %v2343_v1 = vpop.f32.mrb[47].mxu1 }
 0xcfd   : > { %v1519_v43 = vadd.f32 %v1517_v0, %v2787_v8  ;;  %v1520_v44 = vsel %vm270_vm2, %v1518_v42, -inf }
 0xcfe   : > { %1521 = vmax.xlane.f32.xlu0 %v1520_v44 }
 0xcff   : > { %v1523_v45 = vsel %vm270_vm2, %v1519_v43, -inf }
 0xd00   : > { %1524 = vmax.xlane.f32.xlu1 %v1523_v45 }
 0xd05   : > { %v1145_v46 = vpop.xlane.xlu1 %1144 }
 0xd06   : > { %v1149_v47 = vsub.f32 %v1141_v59, %v1145_v46 }
 0xd07   : > { %v1148_v48 = vpop.xlane.xlu0 %1147 }
 0xd08   : > { %v1151_v26 = vmul.f32 1.442695, %v1149_v47  ;;  %v1150_v49 = vsub.f32 %v1142_v10, %v1148_v48 }
 0xd0a   : > { %2539 = vpow2.f32 %v1151_v26  ;;  %v1153_v50 = vmul.f32 1.442695, %v1150_v49 }
 0xd0c   : > { %2541 = vpow2.f32 %v1153_v50 }
 0xd14   : > { %v3090_v51 = vpop.eup %2539 }
 0xd15   : > { %v1155_v52 = vsel %vm270_vm2, %v3090_v51, 0.0 }
 0xd16   : > { %v2542_v53 = vpop.eup %2541  ;;  %1156 = vadd.xlane.f32.xlu0 %v1155_v52 }
 0xd17   : > { %v1158_v54 = vsel %vm270_vm2, %v2542_v53, 0.0 }
 0xd18   : > { %1159 = vadd.xlane.f32.xlu1 %v1158_v54 }
 0xd29   : > { %1293 = vrot.lane.b32.xlu1 %v3035_v39, %s2631_s22  ;;  %s3264_s22 = smov 8  }
 0xd77   : > { %v1272_v55 = vpop.xlane.xlu0 %1271 }
 0xd78   : > { %v1276_v56 = vsub.f32 %v1268_v19, %v1272_v55 }
 0xd79   : > { %v1275_v57 = vpop.xlane.xlu1 %1274 }
 0xd7a   : > { %v1278_v58 = vmul.f32 1.442695, %v1276_v56  ;;  %v1277_v59 = vsub.f32 %v1269_v23, %v1275_v57 }
 0xd7c   : > { %2543 = vpow2.f32 %v1278_v58  ;;  %v1280_v61 = vmul.f32 1.442695, %v1277_v59 }
 0xd7e   : > { %2545 = vpow2.f32 %v1280_v61 }
 0xd83   : > { %v1397_v27 = vpop.xlane.xlu0 %1396 }
 0xd84   : > { %v1401_v28 = vsub.f32 %v3080_v31, %v1397_v27 }
 0xd85   : > { %v1400_v63 = vpop.xlane.xlu1 %1399 }
 0xd86   : > { %v2544_v10 = vpop.eup %2543  ;;  %v1402_v11 = vsub.f32 %v1394_v34, %v1400_v63  ;;  %v1403_v30 = vmul.f32 1.442695, %v1401_v28 }
 0xd87   : > { %v1282_v12 = vsel %vm270_vm2, %v2544_v10, 0.0 }
 0xd88   : > { %v2546_v13 = vpop.eup %2545  ;;  %v1405_v14 = vmul.f32 1.442695, %v1402_v11  ;;  %1283 = vadd.xlane.f32.xlu0 %v1282_v12 }
 0xd89   : > { %v1285_v15 = vsel %vm270_vm2, %v2546_v13, 0.0 }
 0xd8a   : > { %2547 = vpow2.f32 %v1405_v14  ;;  %1286 = vadd.xlane.f32.xlu1 %v1285_v15 }
 0xd8b   : > { %v1522_v29 = vpop.xlane.xlu0 %1521 }
 0xd8c   : > { %v1526_v32 = vsub.f32 %v1518_v42, %v1522_v29 }
 0xd8d   : > { %v1525_v17 = vpop.xlane.xlu1 %1524 }
 0xd8e   : > { %v1527_v19 = vsub.f32 %v1519_v43, %v1525_v17  ;;  %v1528_v33 = vmul.f32 1.442695, %v1526_v32 }
 0xd90   : > { %v1530_v20 = vmul.f32 1.442695, %v1527_v19 }
 0xd92   : > { %2549 = vpow2.f32 %v1530_v20 }
 0xd93   : > { %2551 = vpow2.f32 %v1403_v30  ;;  %v2490_v30 = vld [vmem:[%s1083_s28 + $0x8] sm:$0xff]  }
 0xd94   : > { %v3099_v21 = vpop.eup %2547  ;;  %2553 = vpow2.f32 %v1528_v33 }
 0xd95   : > { %v1410_v23 = vsel %vm270_vm2, %v3099_v21, 0.0 }
 0xd96   : > { %1411 = vadd.xlane.f32.xlu1 %v1410_v23 }
 0xd9c   : > { %v3103_v24 = vpop.eup %2549 }
 0xd9d   : > { %v1535_v25 = vsel %vm270_vm2, %v3103_v24, 0.0  ;;  %v2552_v34 = vpop.eup %2551 }
 0xd9e   : > { %1167 = vrot.lane.b32.xlu0 %v3035_v39, %s2629_s21  ;;  %1536 = vadd.xlane.f32.xlu1 %v1535_v25  ;;  %v1407_v35 = vsel %vm270_vm2, %v2552_v34, 0.0  ;;  %v2554_v36 = vpop.eup %2553  ;;  %s3263_s21 = smov 72  }
 0xd9f   : > { %v1532_v37 = vsel %vm270_vm2, %v2554_v36, 0.0 }
 0xda3   : > { %v1157_v38 = vpop.xlane.xlu0 %1156 }
 0xda5   : > { %v1160_v31 = vpop.xlane.xlu1 %1159 }
 0xda6   : > { %2555 = vrcp.f32 %v1160_v31 }
 0xda7   : > { %2557 = vrcp.f32 %v1157_v38 }
 0xda9   : > { %v1294_v40 = vpop.permute.xlu1 %1293 }
 0xdaf   : > { %1418 = vrot.lane.b32.xlu1 %v3035_v39, %s2635_s26 }
 0xdb0   : > { %v2556_v41 = vpop.eup %2555 }
 0xdb1   : > { %v2558_v0 = vpop.eup %2557  ;;  %v1164_v1 = vmul.f32 %v2556_v41, %v2542_v53 }
 0xdb2   : > { %v1163_v44 = vmul.f32 %v2558_v0, %v3090_v51 }
 0xdb4   : > { %v1165_v46 = vpack.c.bf16 %v1164_v1, %v1163_v44 }
 0xdbd   : > { %1408 = vadd.xlane.f32.xlu0 %v1407_v35 }
 0xdc1   : > { %1533 = vadd.xlane.f32.xlu0 %v1532_v37 }
 0xdd7   : > { %1543 = vrot.lane.b32.xlu0 %v3035_v39, %s3263_s21  ;;  %s1725_s21 = scalar_lea.vmem %s3237_s14, %s2808_s3  ;;  %s2106_s3 = sshll.u32 %s2625_s25, 5 }
 0xdd8   : > { %s3180_s26 = scalar_lea.vmem %s3239_s16, %s2106_s3 }
 0xe15   : > { %v1284_v42 = vpop.xlane.xlu0 %1283 }
 0xe16   : > { %2559 = vrcp.f32 %v1284_v42 }
 0xe17   : > { %v1287_v43 = vpop.xlane.xlu1 %1286 }
 0xe18   : > { %2561 = vrcp.f32 %v1287_v43 }
 0xe19   : > { %v1168_v45 = vpop.permute.xlu0 %1167 }
 0xe1a   : > { %2309 = vmatpush3.bf16.msra.mxu0 %v1168_v45 }
 0xe1b   : > { %2320 = vmatprep.subr.bf16.mxu0 %v2627_v9 }
 0xe1d   : > { %2311 = vmatmul.mubr.msk.bf16.vlgmr.msra.gmra.mrb[16].mxu0 %vm270_vm2, %v1165_v46 }
 0xe1e   : > { %2321 = vmatpush3.bf16.msra.mxu0 %v1294_v40  ;;  %2322 = vmatprep.mubr.msk.bf16.mxu0 %vm2628_vm0, %v2627_v9 }
 0xe1f   : > { %2332 = vmatprep.subr.bf16.mxu0 %v2627_v9 }
 0xe20   : > { %v2560_v39 = vpop.eup %2559 }
 0xe21   : > { %v1290_v48 = vmul.f32 %v2560_v39, %v2544_v10 }
 0xe22   : > { %v2562_v47 = vpop.eup %2561 }
 0xe23   : > { %v1291_v26 = vmul.f32 %v2562_v47, %v2546_v13  ;;  %v1412_v50 = vpop.xlane.xlu1 %1411 }
 0xe24   : > { %2563 = vrcp.f32 %v1412_v50 }
 0xe25   : > { %v1292_v49 = vpack.c.bf16 %v1291_v26, %v1290_v48 }
 0xe27   : > { %2323 = vmatmul.mubr.msk.bf16.vlgmr.msra.gmra.mrb[20].mxu0 %vm270_vm2, %v1292_v49 }
 0xe28   : > { %2334 = vmatprep.mubr.msk.bf16.mxu0 %vm2628_vm0, %v2627_v9 }
 0xe2b   : > { %v1537_v51 = vpop.xlane.xlu1 %1536 }
 0xe2e   : > { %v2564_v55 = vpop.eup %2563 }
 0xe2f   : > { %v1419_v52 = vpop.permute.xlu1 %1418  ;;  %v1416_v57 = vmul.f32 %v2564_v55, %v3099_v21 }
 0xe30   : > { %2333 = vmatpush3.bf16.msra.mxu0 %v1419_v52  ;;  %v2078_v52 = vld [vmem:[%s1088_s2] ss:$0 sm:$0xff] }
 0xe31   : > { %2344 = vmatprep.subr.bf16.mxu0 %v2627_v9 }
 0xe4a   : > { %v1409_v53 = vpop.xlane.xlu0 %1408 }
 0xe4b   : > { %2565 = vrcp.f32 %v1409_v53 }
 0xe4e   : > { %v1534_v54 = vpop.xlane.xlu0 %1533 }
 0xe4f   : > { %2567 = vrcp.f32 %v1534_v54 }
 0xe50   : > { %2569 = vrcp.f32 %v1537_v51 }
 0xe52   : > { %v1544_v63 = vpop.permute.xlu0 %1543 }
 0xe55   : > { %v2566_v56 = vpop.eup %2565 }
 0xe56   : > { %v1415_v58 = vmul.f32 %v2566_v56, %v2552_v34 }
 0xe58   : > { %v1417_v59 = vpack.c.bf16 %v1416_v57, %v1415_v58 }
 0xe59   : > { %v2568_v61 = vpop.eup %2567 }
 0xe5a   : > { %2335 = vmatmul.mubr.msk.bf16.vlgmr.msra.gmra.mrb[24].mxu0 %vm270_vm2, %v1417_v59  ;;  %v2570_v10 = vpop.eup %2569  ;;  %v1540_v11 = vmul.f32 %v2568_v61, %v2554_v36 }
 0xe5b   : > { %2345 = vmatpush3.bf16.msra.mxu0 %v1544_v63  ;;  %2346 = vmatprep.mubr.msk.bf16.mxu0 %vm2628_vm0, %v2627_v9  ;;  %v1541_v12 = vmul.f32 %v2570_v10, %v3103_v24  ;;  %v2489_v24 = vld [vmem:[%s1083_s28] sm:$0xff]  }
 0xe5c   : > { %2358 = vmatprep.subr.bf16.mxu0 %v2627_v9  ;;  %2351 = vmatpush3.bf16.msra.mxu1 %v2489_v24 }
 0xe5d   : > { %v1542_v13 = vpack.c.bf16 %v1541_v12, %v1540_v11  ;;  %2352 = vmatprep.subr.bf16.mxu1 %v2627_v9  ;;  %v2491_v11 = vld [vmem:[%s1725_s21] sm:$0xff]   ;;  %v2494_v12 = vld [vmem:[%s1725_s21 + $0x18] sm:$0xff]  }
 0xe60   : > { %2353 = vmatpush3.bf16.msra.mxu1 %v2490_v30 }
 0xe61   : > { %2378 = vmatprep.subr.bf16.mxu1 %v2627_v9 }
 0xe62   : > { %2347 = vmatmul.mubr.msk.bf16.vlgmr.msra.gmra.mrb[28].mxu0 %vm270_vm2, %v1542_v13  ;;  %v2495_v13 = vld [vmem:[%s1725_s21 + $0x20] sm:$0xff]  }
 0xe63   : > { %2374 = vmatprep.mubr.msk.bf16.mxu0 %vm2628_vm0, %v2627_v9  ;;  %2359 = vmatpush3.bf16.msra.mxu0 %v2491_v11 }
 0xe64   : > { %2360 = vmatprep.subr.bf16.mxu0 %v2627_v9 }
 0xef0   : > { %v1207_v14 = vpop.f32.mrb[16].mxu0 }
 0xef1   : > { %v2312_v15 = vpop.f32.mrb[17].mxu0 }
 0xef2   : > { %v1210_v17 = vpop.f32.mrb[18].mxu0  ;;  %v2497_v15 = vld [vmem:[%s1725_s21 + $0x30] sm:$0xff]  }
 0xef3   : > { %v2313_v19 = vpop.f32.mrb[19].mxu0 }
 0xef4   : > { %v2499_v19 = vld [vmem:[%s3180_s26] sm:$0xff]  }
 0xefa   : > { %v1333_v20 = vpop.f32.mrb[20].mxu0 }
 0xefb   : > { %v2324_v21 = vpop.f32.mrb[21].mxu0 }
 0xefc   : > { %v1336_v23 = vpop.f32.mrb[22].mxu0 }
 0xefd   : > { %v2448_v25 = vpack.i.bf16 %v1336_v23, %v1333_v20  ;;  %v2325_v27 = vpop.f32.mrb[23].mxu0  ;;  %v2500_v20 = vld [vmem:[%s3180_s26 + $0x8] sm:$0xff]  }
 0xeff   : > { %2449 = vrot.lane.b32.xlu1 %v2448_v25, %s3264_s22 }
 0xf2d   : > { %v1458_v28 = vpop.f32.mrb[24].mxu0 }
 0xf2e   : > { %v2336_v29 = vpop.f32.mrb[25].mxu0 }
 0xf2f   : > { %v1461_v32 = vpop.f32.mrb[26].mxu0 }
 0xf30   : > { %v2453_v33 = vpack.i.bf16 %v1461_v32, %v1458_v28  ;;  %v2337_v34 = vpop.f32.mrb[27].mxu0 }
 0xf32   : > { %2454 = vrot.lane.b32.xlu0 %v2453_v33, %s3266_s4  ;;  %s1742_s4 = scalar_lea.vmem %s3238_s15, %s2625_s25  ;;  %s81_s25 = sadd.s32 1, %s2625_s25  }
 0xf33   : > { %p78_p0 = scmp.ge.s32.totalorder %s81_s25, 2  }
 0xf34   :  { %s2643_s2 = smov (%p78_p0), [#allocation2]  }
 0xf35   : > { %v1583_v35 = vpop.f32.mrb[28].mxu0  ;;  %s1977_s0 = sshll.u32 (%p78_p0), %s2643_s2, 4  ;;  %s1978_s0 = int_to_ptr.vmem [resolvable:$true] %s1977_s0 }
 0xf36   : > { %v2348_v36 = vpop.f32.mrb[29].mxu0  ;;  %s2579_s30 = scalar_lea.vmem (%p78_p0), %s1978_s0, 256  ;;  %p2584_p2 = scmp.lt.s32.totalorder (%p78_p0), %s1978_s0, %s1978_s0 }
 0xf37   : > { %v1586_v37 = vpop.f32.mrb[30].mxu0  ;;  %p2580_p1 = scmp.ne.s32.totalorder (%p78_p0), %s1978_s0, %s2579_s30  ;;  %p2585_p3 = scmp.lt.s32.totalorder (%p78_p0), %s2579_s30, %s2579_s30 }
 0xf38   : > { %v2458_v31 = vpack.i.bf16 %v1586_v37, %v1583_v35  ;;  %v2349_v38 = vpop.f32.mrb[31].mxu0 }
 0xf39   :  { %p2586_p4 = por (%p78_p0), %p2585_p3, %p2584_p2 }
 0xf3a   : > { %2459 = vrot.lane.b32.xlu1 %v2458_v31, %s3267_s24  ;;  %v1713_v31 = vsub.s32 1, %v3006_v16 }
 0xf3b   :  { %p2587_p5 = pnand (%p78_p0), %p2586_p4, %p2580_p1 }
 0xf71   : > { %v2450_v40 = vpop.permute.xlu1 %2449 }
 0xf72   : > { %v2452_v42 = vunpack.i.h.bf16 %v2450_v40  ;;  %v2451_v0 = vunpack.i.l.bf16 %v2450_v40 }
 0xf74   : > { %v1615_v45 = vsel %vm218_vm1, %v1210_v17, %v2452_v42  ;;  %v1614_v46 = vsel %vm218_vm1, %v1207_v14, %v2451_v0  ;;  %v2496_v14 = vld [vmem:[%s1725_s21 + $0x28] sm:$0xff]   ;;  %v2498_v17 = vld [vmem:[%s1725_s21 + $0x38] sm:$0xff]   ;;  %v1714_v42 = vrot.slane %v3012_v18, %v1713_v31 }
 0xfa4   : > { %v2455_v41 = vpop.permute.xlu0 %2454 }
 0xfa5   : > { %v2457_v1 = vunpack.i.h.bf16 %v2455_v41  ;;  %v2456_v43 = vunpack.i.l.bf16 %v2455_v41 }
 0xfa7   : > { %v1617_v48 = vsel %vm270_vm2, %v1615_v45, %v2457_v1  ;;  %v1616_v26 = vsel %vm270_vm2, %v1614_v46, %v2456_v43  ;;  %v1720_v45 = vrot.slane %v3019_v22, %v1713_v31 }
 0xfac   : > { %v2460_v44 = vpop.permute.xlu1 %2459 }
 0xfad   : > { %v2462_v39 = vunpack.i.h.bf16 %v2460_v44  ;;  %v2461_v47 = vunpack.i.l.bf16 %v2460_v44 }
 0xfaf   : > { %v1619_v49 = vsel %vm744_vm3, %v1617_v48, %v2462_v39  ;;  %v1618_v50 = vsel %vm744_vm3, %v1616_v26, %v2461_v47  ;;  %v2501_v26 = vld [vmem:[%s3180_s26 + $0x10] sm:$0xff]  }
 0xfb0   : > { %v1620_v51 = vpack.c.bf16 %v1619_v49, %v1618_v50  ;;  %v2502_v49 = vld [vmem:[%s3180_s26 + $0x18] sm:$0xff]   ;;  %v2083_v50 = vld [vmem:[%s1742_s4] ss:$0 sm:$0xff] }
 0xfb2   : > { %2355 = vmatmul.mubr.msk.bf16.vlgmr.msra.gmra.mrb[48].mxu1 %vm766_vm4, %v1620_v51 }
 0xfb3   : > { %2386 = vmatprep.mubr.msk.bf16.mxu1 %vm2628_vm0, %v2627_v9  ;;  %2379 = vmatpush3.bf16.msra.mxu1 %v2499_v19 }
 0xfb4   : > { %2380 = vmatprep.subr.bf16.mxu1 %v2627_v9 }
 0xfb7   : > { %2381 = vmatpush3.bf16.msra.mxu1 %v2500_v20 }
 0xfb8   : > { %2382 = vmatprep.subr.bf16.mxu1 %v2627_v9 }
 0xfbb   : > { %2383 = vmatpush3.bf16.msra.mxu1 %v2501_v26 }
 0xfbc   : > { %2384 = vmatprep.subr.bf16.mxu1 %v2627_v9 }
 0xfbf   : > { %2385 = vmatpush3.bf16.msra.mxu1 %v2502_v49 }
0x1085   : > { %v1676_v53 = vpop.f32.mrb[48].mxu1 }
0x1086   : > { %v1677_v54 = vadd.f32 %v2078_v52, %v1676_v53  ;;  %v2356_v55 = vpop.f32.mrb[49].mxu1 }
0x1087   : > { %v1679_v56 = vpop.f32.mrb[50].mxu1 }
0x1088   : > { %v1683_v57 = vadd.f32 %v1677_v54, %v3023_v60  ;;  %v1680_v58 = vadd.f32 %v2078_v52, %v1679_v56  ;;  %v2357_v59 = vpop.f32.mrb[51].mxu1  ;;  %v2492_v60 = vld [vmem:[%s1725_s21 + $0x8] sm:$0xff]  }
0x1089   : > { %2361 = vmatpush3.bf16.msra.mxu0 %v2492_v60 }
0x108a   : > { %v3160_v61 = vadd.f32 %v1680_v58, %v3025_v62  ;;  %1685 = vadd.xlane.f32.xlu0 %v1683_v57  ;;  %v1691_v63 = vmul.f32 %v1683_v57, %v1683_v57  ;;  %2362 = vmatprep.subr.bf16.mxu0 %v2627_v9  ;;  %v2493_v62 = vld [vmem:[%s1725_s21 + $0x10] sm:$0xff]  }
0x108c   : > { %1687 = vadd.xlane.f32.xlu1 %v3160_v61  ;;  %v1692_v10 = vmul.f32 %v3160_v61, %v3160_v61 }
0x108d   : > { %2363 = vmatpush3.bf16.msra.mxu0 %v2493_v62 }
0x108e   : > { %1693 = vadd.xlane.f32.xlu0 %v1691_v63  ;;  %2364 = vmatprep.subr.bf16.mxu0 %v2627_v9 }
0x1091   : > { %2365 = vmatpush3.bf16.msra.mxu0 %v2494_v12 }
0x1092   : > { %1695 = vadd.xlane.f32.xlu0 %v1692_v10  ;;  %2366 = vmatprep.subr.bf16.mxu0 %v2627_v9 }
0x1095   : > { %2367 = vmatpush3.bf16.msra.mxu0 %v2495_v13 }
0x1096   : > { %2368 = vmatprep.subr.bf16.mxu0 %v2627_v9 }
0x1099   : > { %2369 = vmatpush3.bf16.msra.mxu0 %v2496_v14 }
0x109a   : > { %2370 = vmatprep.subr.bf16.mxu0 %v2627_v9 }
0x109d   : > { %2371 = vmatpush3.bf16.msra.mxu0 %v2497_v15 }
0x109e   : > { %2372 = vmatprep.subr.bf16.mxu0 %v2627_v9  ;;  %v2094_v9 = vld [vmem:[%s1853_s1] ss:$0 sm:$0xff] }
0x10a1   : > { %2373 = vmatpush3.bf16.msra.mxu0 %v2498_v17 }
0x1117   : > { %v1686_v21 = vpop.xlane.xlu0 %1685 }
0x1118   : > { %v1689_v23 = vmul.f32 0.03125, %v1686_v21 }
0x1119   : > { %v1688_v25 = vpop.xlane.xlu1 %1687 }
0x111a   : > { %v1699_v24 = vmul.f32 %v1689_v23, %v1689_v23  ;;  %v1690_v28 = vmul.f32 0.03125, %v1688_v25  ;;  %v1703_v38 = vsub.f32 %v1683_v57, %v1689_v23 }
0x111b   : > { %v1694_v27 = vpop.xlane.xlu0 %1693 }
0x111c   : > { %v1697_v29 = vmul.f32 0.03125, %v1694_v27  ;;  %v1700_v33 = vmul.f32 %v1690_v28, %v1690_v28  ;;  %v1704_v0 = vsub.f32 %v3160_v61, %v1690_v28 }
0x111e   : > { %v1701_v30 = vsub.f32 %v1697_v29, %v1699_v24 }
0x111f   : > { %v1696_v32 = vpop.xlane.xlu0 %1695 }
0x1120   : > { %v1705_v34 = vadd.f32 1e-05, %v1701_v30  ;;  %v1698_v35 = vmul.f32 0.03125, %v1696_v32 }
0x1122   : > { %2571 = vrsqrt.f32 %v1705_v34  ;;  %v1702_v36 = vsub.f32 %v1698_v35, %v1700_v33  ;;  %v1960_v35 = vsub.s32 2, %v3006_v16 }
0x1124   : > { %v1706_v37 = vadd.f32 1e-05, %v1702_v36 }
0x1126   : > { %2573 = vrsqrt.f32 %v1706_v37  ;;  %v1961_v37 = vrot.slane %v3012_v18, %v1960_v35 }
0x112c   : > { %v2572_v40 = vpop.eup %2571 }
0x112d   : > { %v1709_v41 = vmul.f32 %v2572_v40, %v1703_v38  ;;  %v1967_v38 = vrot.slane %v3019_v22, %v1960_v35 }
0x112f   : > { %v1715_v44 = vmul.f32 %v1714_v42, %v1709_v41 }
0x1130   : > { %v2574_v1 = vpop.eup %2573 }
0x1131   : > { %v1710_v43 = vmul.f32 %v2574_v1, %v1704_v0  ;;  %v1721_v39 = vadd.f32 %v1720_v45, %v1715_v44 }
0x1133   : > { %v1716_v46 = vmul.f32 %v1714_v42, %v1710_v43 }
0x1135   : > { %v1722_v47 = vadd.f32 %v1720_v45, %v1716_v46 }
0x1137   : > { %v1723_v48 = vpack.c.bf16 %v1722_v47, %v1721_v39 }
0x1139   : > { %2375 = vmatmul.mubr.bf16.vlgmr.msra.gmra.mrb[32].mxu0 %v1723_v48 }
0x120c   : > { %v1832_v51 = vpop.f32.mrb[32].mxu0 }
0x120d   : > { %v1833_v52 = vadd.f32 %v2083_v50, %v1832_v51  ;;  %v2376_v53 = vpop.f32.mrb[33].mxu0 }
0x120e   : > { %v1835_v54 = vpop.f32.mrb[34].mxu0 }
0x120f   : > { %v1836_v55 = vadd.f32 %v2083_v50, %v1835_v54  ;;  %v2377_v56 = vpop.f32.mrb[35].mxu0  ;;  %v1839_v57 = vmax.f32 %v1833_v52, 0.0 }
0x1211   : > { %v1840_v58 = vmax.f32 %v1836_v55, 0.0 }
0x1213   : > { %v1841_v59 = vpack.c.bf16 %v1840_v58, %v1839_v57 }
0x1215   : > { %2387 = vmatmul.mubr.msk.bf16.vlgmr.msra.gmra.mrb[52].mxu1 %vm1885_vm5, %v1841_v59 }
0x12e8   : > { %v1923_v61 = vpop.f32.mrb[52].mxu1 }
0x12e9   : > { %v1924_v63 = vadd.f32 %v2094_v9, %v1923_v61  ;;  %v2388_v10 = vpop.f32.mrb[53].mxu1 }
0x12ea   : > { %v1926_v11 = vpop.f32.mrb[54].mxu1 }
0x12eb   : > { %v1930_v60 = vadd.f32 %v1924_v63, %v1721_v39  ;;  %v1927_v62 = vadd.f32 %v2094_v9, %v1926_v11  ;;  %v2389_v12 = vpop.f32.mrb[55].mxu1 }
0x12ed   : > { %v1931_v13 = vadd.f32 %v1927_v62, %v1722_v47  ;;  %1932 = vadd.xlane.f32.xlu1 %v1930_v60  ;;  %v1938_v14 = vmul.f32 %v1930_v60, %v1930_v60 }
0x12ef   : > { %1934 = vadd.xlane.f32.xlu0 %v1931_v13  ;;  %v1939_v15 = vmul.f32 %v1931_v13, %v1931_v13 }
0x12f1   : > { %1940 = vadd.xlane.f32.xlu1 %v1938_v14 }
0x12f3   : > { %1942 = vadd.xlane.f32.xlu0 %v1939_v15 }
0x137a   : > { %v1933_v17 = vpop.xlane.xlu1 %1932 }
0x137b   : > { %v1936_v19 = vmul.f32 0.03125, %v1933_v17 }
0x137c   : > { %v1935_v20 = vpop.xlane.xlu0 %1934 }
0x137d   : > { %v1937_v21 = vmul.f32 0.03125, %v1935_v20  ;;  %v1946_v25 = vmul.f32 %v1936_v19, %v1936_v19  ;;  %v1950_v36 = vsub.f32 %v1930_v60, %v1936_v19 }
0x137e   : > { %v1941_v23 = vpop.xlane.xlu1 %1940 }
0x137f   : > { %v1944_v27 = vmul.f32 0.03125, %v1941_v23  ;;  %v1947_v28 = vmul.f32 %v1937_v21, %v1937_v21  ;;  %v1951_v40 = vsub.f32 %v1931_v13, %v1937_v21 }
0x1380   : > { %v1943_v24 = vpop.xlane.xlu0 %1942 }
0x1381   : > { %v1948_v29 = vsub.f32 %v1944_v27, %v1946_v25  ;;  %v1945_v30 = vmul.f32 0.03125, %v1943_v24 }
0x1383   : > { %v1952_v32 = vadd.f32 1e-05, %v1948_v29  ;;  %v1949_v33 = vsub.f32 %v1945_v30, %v1947_v28 }
0x1385   : > { %2575 = vrsqrt.f32 %v1952_v32  ;;  %v1953_v34 = vadd.f32 1e-05, %v1949_v33 }
0x1387   : > { %2577 = vrsqrt.f32 %v1953_v34 }
0x138f   : > { %v2576_v31 = vpop.eup %2575 }
0x1390   : > { %v1956_v41 = vmul.f32 %v2576_v31, %v1950_v36 }
0x1391   : > { %v2578_v42 = vpop.eup %2577 }
0x1392   : > { %v1962_v0 = vmul.f32 %v1961_v37, %v1956_v41  ;;  %v1957_v1 = vmul.f32 %v2578_v42, %v1951_v40  ;;  %80 = sbr.rel (!%p78_p0) target bundleno = 19 (0x13), region = 123 }
0x1394   : > { %v1968_v43 = vadd.f32 %v1967_v38, %v1962_v0   ;;  %v1963_v44 = vmul.f32 %v1961_v37, %v1957_v1 }
0x1396   : > { %v1969_v45 = vadd.f32 %v1967_v38, %v1963_v44   ;;  %v3269_v0 = vmov %v1968_v43  ;;  %1970 = vst [vmem:[#allocation2] sm:$0xff] (%p78_p0), %v1968_v43 }
0x1398   : > { %v3268_v1 = vmov %v1969_v45  ;;  %1971 = vst [vmem:[#allocation2 + $0x8] sm:$0xff] (%p78_p0), %v1969_v45 }
0x1399   :  { %2590 = shalt.err (!%p2587_p5)
}
0x139a   :  { %s2591_s22 = scalar_lea.hbm %s3243_s20, 256 }
0x139b   :  { %p2592_p6 = scmp.ne.s32.totalorder %s3243_s20, %s2591_s22  ;;  %p2595_p7 = scmp.lt.u32.totalorder %s2591_s22, %s3243_s20 }
0x139d   :  { %p2597_p8 = pnand %p2595_p7, %p2592_p6 }
0x139f   :  { %2600 = shalt.err (!%p2597_p8)
}
0x13a0   :  { %s2644_s7 = smov 128   ;;  %s2645_s8 = smov 8  }
0x13a1   :  { %1983 = dma.vmem_to_hbm [thread:$0]  %s1978_s0, 256, %s3243_s20, [#allocation3], %s2644_s7, %s2644_s7, %s2645_s8  }
0x13a2   :  { %2613 = dma.done.wait [#allocation3], 256  }
0x13a3   :  { %2614 = vsyncadd [#allocation3], 4294967040 }
0x13a4   :  { %1987 = vsyncpa [#allocation3], 1 }

</bundles_post_ra>
